<compile_context>
chip_gen: v7x
topology: tpu7x:2x2x1
jax: 0.10.0
libtpu: 0.0.40
codegen_flags: <defaults>
</compile_context>

<pallas_src>
import functools

import jax
import jax.numpy as jnp
from jax.experimental import pallas as pl
from jax.experimental.pallas import tpu as pltpu

LANES = 128
NB_MAX = 32                # max images per grid step (sublane/batch tile)

C1, C2, FC1, FC2 = 10, 20, 50, 10
C1P, C2P, FC1P = 16, 32, 128   # dense channel packings (10->16, 20->32, 50->128)
K = 5
H0 = 28                    # input spatial
H1 = H0 - K + 1            # 24  (conv1 out)
P1 = H1 // 2               # 12  (pool1 out)
H2 = P1 - K + 1            # 8   (conv2 out)
P2 = H2 // 2               # 4   (pool2 out)


# ------------------------------ fused kernel -------------------------------

def _net_kernel(x_ref, cw1_ref, b1_ref, w2_ref, b2_ref,
                fc1w_ref, fc1b_ref, fc2w_ref, fc2b_ref,
                o_ref, h1_ref, *, nb, compute_dtype):
    f32 = jnp.float32

    def mm(a, b):
        return jnp.dot(a, b, preferred_element_type=f32)

    # ---- conv1 (1->10, 5x5): one MXU matmul per ow-parity on the
    #      wrapper-built kh-im2col block (rows=(oh,n), lanes=(kh,w)) ----------
    lhs1 = x_ref[...]                                   # (24*nb, 140)
    c1e = mm(lhs1, cw1_ref[0])                          # (24*nb, 192)  ow = 2j
    c1o = mm(lhs1, cw1_ref[1])                          # (24*nb, 192)  ow = 2j+1

    # ---- 2x2 max-pool + bias + ReLU -> h1  rows=(i,n), lanes=(j,c1) ---------
    pw = jnp.maximum(c1e, c1o)                          # pooled over ow pairs
    pwr = pw.reshape(P1, 2 * nb, P1 * C1P)              # rows (i, p, n)
    ph = jnp.maximum(pwr[:, :nb, :], pwr[:, nb:, :])    # pooled over oh pairs
    h1 = jnp.maximum(ph.reshape(P1 * nb, P1 * C1P) + b1_ref[...], 0.0)
    h1_ref[...] = h1.astype(compute_dtype)              # bf16 scratch for conv2

    # ---- conv2 (10->20, 5x5): 5 banded matmuls; kw band and both ow2
    #      parities are folded into the 256 output lanes ----------------------
    # TODO(synk): Dropout2d (conv2_drop) is identity (eval mode only).
    c2 = mm(h1_ref[0:H2 * nb, :], w2_ref[0])            # (8*nb, 256)
    for kh in range(1, K):
        c2 = c2 + mm(h1_ref[kh * nb:kh * nb + H2 * nb, :], w2_ref[kh])

    # ---- 2x2 max-pool + bias + ReLU -> h2  rows=(i2,n), lanes=(j2,c2) -------
    pw2 = jnp.maximum(c2[:, :P2 * C2P], c2[:, P2 * C2P:])   # parity max (128|128)
    pw2r = pw2.reshape(P2, 2 * nb, P2 * C2P)
    ph2 = jnp.maximum(pw2r[:, :nb, :], pw2r[:, nb:, :])     # pooled over oh2
    h2 = jnp.maximum(ph2.reshape(P2 * nb, P2 * C2P) + b2_ref[...], 0.0)
    h2 = h2.astype(compute_dtype)                       # (4*nb, 128)

    # ---- fc1 (320->50) + ReLU: 4 per-spatial-row matmuls; PyTorch's
    #      x.view(-1, 320) order is folded into the wrapper-permuted weight ---
    f1 = mm(h2[0:nb, :], fc1w_ref[0])
    for i2 in range(1, P2):
        f1 = f1 + mm(h2[i2 * nb:(i2 + 1) * nb, :], fc1w_ref[i2])
    f1 = jnp.maximum(f1 + fc1b_ref[...], 0.0)           # (nb, 128)
    # TODO(synk): F.dropout is identity (eval mode only).

    # ---- fc2 (50->10) + log-softmax over the 10 real lanes ------------------
    f2 = mm(f1.astype(compute_dtype), fc2w_ref[...]) + fc2b_ref[...]
    lane = jax.lax.broadcasted_iota(jnp.int32, (nb, LANES), 1)
    valid = lane < FC2
    z = jnp.where(valid, f2, -1e30)
    m = jnp.max(z, axis=-1, keepdims=True)
    e = jnp.where(valid, jnp.exp(z - m), 0.0)
    lse = jnp.log(jnp.sum(e, axis=-1, keepdims=True))
    o_ref[...] = (z - m) - lse                          # full-lane (nb,128) store


# ---------------------------- weight preparation ---------------------------

def _prepare_weights(params, compute_dtype):
    f32 = jnp.float32
    w1 = params["conv1_w"].astype(f32)     # (10, 1, 5, 5)
    b1 = params["conv1_b"].astype(f32)
    w2 = params["conv2_w"].astype(f32)     # (20, 10, 5, 5)
    b2 = params["conv2_b"].astype(f32)
    f1w = params["fc1_w"].astype(f32)      # (50, 320)
    f1b = params["fc1_b"].astype(f32)
    f2w = params["fc2_w"].astype(f32)      # (10, 50)
    f2b = params["fc2_b"].astype(f32)

    p_idx = jnp.arange(2)

    # conv1 banded, ow-parity split:
    #   cw1[p, kh*28 + w, j*16 + c] = w1[c, 0, kh, w - (2j + p)]   (valid taps)
    w1k = w1[:, 0]                                              # (10, 5, 5)
    w_idx = jnp.arange(H0)
    j_idx = jnp.arange(P1)
    diff = (w_idx[None, :, None]
            - (2 * j_idx[None, None, :] + p_idx[:, None, None]))   # (2, 28, 12)
    valid = (diff >= 0) & (diff < K)
    vals = w1k[:, :, jnp.clip(diff, 0, K - 1)]                  # (10,5,2,28,12)
    vals = jnp.where(valid[None, None], vals, 0.0)
    vals = jnp.transpose(vals, (2, 1, 3, 4, 0))                 # (p,kh,w,j,c)
    vals = jnp.pad(vals, ((0, 0),) * 4 + ((0, C1P - C1),))
    cw1 = vals.reshape(2, K * H0, P1 * C1P)                     # (2, 140, 192)
    b1p = jnp.tile(jnp.pad(b1, (0, C1P - C1)), (P1,)).reshape(1, P1 * C1P)

    # conv2 banded, kw + ow2-parity folded into the 256 output columns:
    #   w2b[kh, j*16 + ci, p*128 + j2*32 + co] = w2[co, ci, kh, j - (2*j2 + p)]
    j2_idx = jnp.arange(P2)
    diff2 = (j_idx[None, :, None]
             - (2 * j2_idx[None, None, :] + p_idx[:, None, None]))  # (2, 12, 4)
    valid2 = (diff2 >= 0) & (diff2 < K)
    vals2 = w2[:, :, :, jnp.clip(diff2, 0, K - 1)]              # (20,10,5,2,12,4)
    vals2 = jnp.where(valid2[None, None, None], vals2, 0.0)
    vals2 = jnp.transpose(vals2, (2, 4, 1, 3, 5, 0))            # (kh,j,ci,p,j2,co)
    vals2 = jnp.pad(vals2, ((0, 0), (0, 0), (0, C1P - C1),
                            (0, 0), (0, 0), (0, C2P - C2)))
    w2b = vals2.reshape(K, P1 * C1P, 2 * P2 * C2P)              # (5, 192, 256)
    b2p = jnp.tile(jnp.pad(b2, (0, C2P - C2)), (P2,)).reshape(1, P2 * C2P)

    # fc1: fc1wm[i2, j2*32 + c2, o] = fc1_w[o, c2*16 + i2*4 + j2]
    f1wr = jnp.transpose(f1w.reshape(FC1, C2, P2, P2), (2, 3, 1, 0))  # (i2,j2,c2,o)
    f1wr = jnp.pad(f1wr, ((0, 0), (0, 0), (0, C2P - C2), (0, FC1P - FC1)))
    fc1wm = f1wr.reshape(P2, P2 * C2P, FC1P)                    # (4, 128, 128)
    fc1bp = jnp.pad(f1b, (0, FC1P - FC1)).reshape(1, FC1P)

    # fc2: fc2wm[i, o] = fc2_w[o, i]
    fc2wm = jnp.pad(f2w.T, ((0, FC1P - FC1), (0, LANES - FC2))) # (128, 128)
    fc2bp = jnp.pad(f2b, (0, LANES - FC2)).reshape(1, LANES)

    cdt = compute_dtype
    return (cw1.astype(cdt), b1p, w2b.astype(cdt), b2p,
            fc1wm.astype(cdt), fc1bp, fc2wm.astype(cdt), fc2bp)


# --------------------------------- wrapper ----------------------------------

@functools.partial(jax.jit, static_argnames=("compute_dtype",))
def net_forward(x_nchw, params, compute_dtype=jnp.bfloat16):
    assert x_nchw.ndim == 4 and x_nchw.shape[1:] == (1, H0, H0), x_nchw.shape
    N = x_nchw.shape[0]
    nb = min(NB_MAX, 8 * (-(-N // 8)))     # images per grid step (multiple of 8)
    G = -(-N // nb)                        # batch tiles
    NP = G * nb

    x = x_nchw.reshape(N, H0, H0).astype(jnp.float32)
    if NP != N:
        x = jnp.concatenate([x, jnp.zeros((NP - N, H0, H0), jnp.float32)], 0)
    # wrapper-side kh-im2col:  rows = (g, oh, n), lanes = (kh, w)
    xg = x.reshape(G, nb, H0, H0)
    slabs = jnp.stack([xg[:, :, kh:kh + H1, :] for kh in range(K)], axis=2)
    lhs = jnp.transpose(slabs, (0, 3, 1, 2, 4))        # (G, 24, nb, 5, 28)
    lhs = lhs.reshape(G * H1 * nb, K * H0).astype(compute_dtype)

    cw1, b1p, w2b, b2p, fc1wm, fc1bp, fc2wm, fc2bp = _prepare_weights(
        params, compute_dtype)

    kernel = functools.partial(_net_kernel, nb=nb, compute_dtype=compute_dtype)
    out = pl.pallas_call(
        kernel,
        out_shape=jax.ShapeDtypeStruct((G * nb, LANES), jnp.float32),
        grid_spec=pltpu.PrefetchScalarGridSpec(
            num_scalar_prefetch=0,
            grid=(G,),
            in_specs=[
                pl.BlockSpec((H1 * nb, K * H0), lambda g: (g, 0)),        # x im2col
                pl.BlockSpec((2, K * H0, P1 * C1P), lambda g: (0, 0, 0)), # cw1 e/o
                pl.BlockSpec((1, P1 * C1P), lambda g: (0, 0)),            # b1
                pl.BlockSpec((K, P1 * C1P, 2 * P2 * C2P),
                             lambda g: (0, 0, 0)),                        # w2 banded
                pl.BlockSpec((1, P2 * C2P), lambda g: (0, 0)),            # b2
                pl.BlockSpec((P2, P2 * C2P, FC1P), lambda g: (0, 0, 0)),  # fc1w
                pl.BlockSpec((1, FC1P), lambda g: (0, 0)),                # fc1b
                pl.BlockSpec((FC1P, LANES), lambda g: (0, 0)),            # fc2w
                pl.BlockSpec((1, LANES), lambda g: (0, 0)),               # fc2b
            ],
            out_specs=pl.BlockSpec((nb, LANES), lambda g: (g, 0)),
            scratch_shapes=[pltpu.VMEM((P1 * nb, P1 * C1P), compute_dtype)],
        ),
        compiler_params=pltpu.CompilerParams(
            dimension_semantics=("parallel",),
            vmem_limit_bytes=32 * 1024 * 1024),
    )(lhs, cw1, b1p, w2b, b2p, fc1wm, fc1bp, fc2wm, fc2bp)

    return out[:N, :FC2]


# -------------------------- pure-JAX reference ------------------------------

def _im2col(x_nhwc, k):
    n, h, w, c = x_nhwc.shape
    oh, ow = h - k + 1, w - k + 1
    patches = []
    for kh in range(k):
        for kw in range(k):
            patches.append(x_nhwc[:, kh:kh + oh, kw:kw + ow, :])
    p = jnp.stack(patches, axis=3)
    return p.reshape(n * oh * ow, k * k * c)


def _conv_w_as_matrix(w_oihw, k):
    return jnp.transpose(w_oihw, (2, 3, 1, 0)).reshape(
        k * k * w_oihw.shape[1], w_oihw.shape[0])


def net_forward_ref(x_nchw, params):
    N = x_nchw.shape[0]
    x = jnp.transpose(x_nchw, (0, 2, 3, 1)).astype(jnp.float32)

    def conv(inp, w, b, k):
        p = _im2col(inp, k)
        y = p @ _conv_w_as_matrix(w, k) + b
        oh = inp.shape[1] - k + 1
        return y.reshape(N, oh, oh, w.shape[0])

    def pool_relu(z):
        n, h, w, c = z.shape
        z = z.reshape(n, h // 2, 2, w // 2, 2, c)
        return jnp.maximum(jnp.max(z, axis=(2, 4)), 0.0)

    h1 = pool_relu(conv(x, params["conv1_w"], params["conv1_b"], 5))
    h2 = pool_relu(conv(h1, params["conv2_w"], params["conv2_b"], 5))
    flat = jnp.transpose(h2, (0, 3, 1, 2)).reshape(N, 320)
    f1 = jnp.maximum(flat @ params["fc1_w"].T + params["fc1_b"], 0.0)
    f2 = f1 @ params["fc2_w"].T + params["fc2_b"]
    return jax.nn.log_softmax(f2, axis=1)


# --------------------------------- main -------------------------------------

if __name__ == "__main__":
    key = jax.random.PRNGKey(0)
    ks = jax.random.split(key, 9)
    params = {
        "conv1_w": 0.1 * jax.random.normal(ks[0], (10, 1, 5, 5), jnp.float32),
        "conv1_b": 0.1 * jax.random.normal(ks[1], (10,), jnp.float32),
        "conv2_w": 0.1 * jax.random.normal(ks[2], (20, 10, 5, 5), jnp.float32),
        "conv2_b": 0.1 * jax.random.normal(ks[3], (20,), jnp.float32),
        "fc1_w": 0.1 * jax.random.normal(ks[4], (50, 320), jnp.float32),
        "fc1_b": 0.1 * jax.random.normal(ks[5], (50,), jnp.float32),
        "fc2_w": 0.1 * jax.random.normal(ks[6], (10, 50), jnp.float32),
        "fc2_b": 0.1 * jax.random.normal(ks[7], (10,), jnp.float32),
    }
    # MNIST-shaped input (batch=2, 1 channel, 28x28) -- required by the
    # hard-coded 320 = 20*4*4 flatten in the module.
    x = jax.random.normal(ks[8], (2, 1, 28, 28), jnp.float32)

    with jax.default_matmul_precision("highest"):
        ref = jax.block_until_ready(net_forward_ref(x, params))

    # Exactness check: f32 operand path.
    out_f32 = jax.block_until_ready(
        net_forward(x, params, compute_dtype=jnp.float32))
    assert out_f32.shape == (2, 10), out_f32.shape
    assert jnp.allclose(out_f32, ref, atol=1e-4, rtol=1e-4), (
        "f32 mismatch vs pure-JAX reference, max abs err = "
        f"{float(jnp.max(jnp.abs(out_f32 - ref)))}")

    # Fast path: bf16 operands, f32 accumulation (looser tolerance).
    out_bf16 = jax.block_until_ready(net_forward(x, params))
    assert out_bf16.shape == (2, 10), out_bf16.shape
    assert jnp.allclose(out_bf16, ref, atol=5e-2, rtol=5e-2), (
        "bf16 mismatch vs pure-JAX reference, max abs err = "
        f"{float(jnp.max(jnp.abs(out_bf16 - ref)))}")

    print("KERNEL_OK")
</pallas_src>

<mosaic_0001>
module attributes {stable_mosaic.version = 11 : i64} {
  func.func @_net_kernel(%arg0: i32, %arg1: memref<192x140xf32, #tpu.memory_space<vmem>>, %arg2: memref<2x140x192xf32, #tpu.memory_space<vmem>>, %arg3: memref<1x192xf32, #tpu.memory_space<vmem>>, %arg4: memref<5x192x256xf32, #tpu.memory_space<vmem>>, %arg5: memref<1x128xf32, #tpu.memory_space<vmem>>, %arg6: memref<4x128x128xf32, #tpu.memory_space<vmem>>, %arg7: memref<1x128xf32, #tpu.memory_space<vmem>>, %arg8: memref<128x128xf32, #tpu.memory_space<vmem>>, %arg9: memref<1x128xf32, #tpu.memory_space<vmem>>, %arg10: memref<8x128xf32, #tpu.memory_space<vmem>>, %arg11: memref<96x192xf32, #tpu.memory_space<vmem>>) attributes {dimension_semantics = [#tpu.dimension_semantics<parallel>], iteration_bounds = array<i64: 1>, scalar_prefetch = 0 : i64, scratch_operands = 1 : i64, tpu.core_type = #tpu.core_type<tc>, window_params = [{transform_indices = @transform_0, window_bounds = array<i64: 192, 140>}, {pipeline_mode = #tpu.pipeline_mode<synchronous>, transform_indices = @transform_1, window_bounds = array<i64: 2, 140, 192>}, {pipeline_mode = #tpu.pipeline_mode<synchronous>, transform_indices = @transform_2, window_bounds = array<i64: 1, 192>}, {pipeline_mode = #tpu.pipeline_mode<synchronous>, transform_indices = @transform_3, window_bounds = array<i64: 5, 192, 256>}, {pipeline_mode = #tpu.pipeline_mode<synchronous>, transform_indices = @transform_4, window_bounds = array<i64: 1, 128>}, {pipeline_mode = #tpu.pipeline_mode<synchronous>, transform_indices = @transform_5, window_bounds = array<i64: 4, 128, 128>}, {pipeline_mode = #tpu.pipeline_mode<synchronous>, transform_indices = @transform_6, window_bounds = array<i64: 1, 128>}, {pipeline_mode = #tpu.pipeline_mode<synchronous>, transform_indices = @transform_7, window_bounds = array<i64: 128, 128>}, {pipeline_mode = #tpu.pipeline_mode<synchronous>, transform_indices = @transform_8, window_bounds = array<i64: 1, 128>}, {transform_indices = @transform_9, window_bounds = array<i64: 8, 128>}]} {
    %c0 = arith.constant 0 : index
    %c0_0 = arith.constant 0 : index
    %0 = vector.load %arg1[%c0, %c0_0] : memref<192x140xf32, #tpu.memory_space<vmem>>, vector<192x140xf32>
    %c0_1 = arith.constant 0 : index
    %c0_2 = arith.constant 0 : index
    %c0_3 = arith.constant 0 : index
    %1 = vector.load %arg2[%c0_1, %c0_2, %c0_3] : memref<2x140x192xf32, #tpu.memory_space<vmem>>, vector<1x140x192xf32>
    %2 = vector.shape_cast %1 : vector<1x140x192xf32> to vector<140x192xf32>
    %cst = arith.constant dense<0.000000e+00> : vector<192x192xf32>
    %3 = tpu.matmul %0, %2, %cst {dimension_numbers = #tpu.dot_dimension_numbers<[1], [0], [0], [1], [0, 0, 1, 1], [], []>} : vector<192x140xf32>, vector<140x192xf32>, vector<192x192xf32> -> vector<192x192xf32>
    %c1 = arith.constant 1 : index
    %c0_4 = arith.constant 0 : index
    %c0_5 = arith.constant 0 : index
    %4 = vector.load %arg2[%c1, %c0_4, %c0_5] : memref<2x140x192xf32, #tpu.memory_space<vmem>>, vector<1x140x192xf32>
    %5 = vector.shape_cast %4 : vector<1x140x192xf32> to vector<140x192xf32>
    %cst_6 = arith.constant dense<0.000000e+00> : vector<192x192xf32>
    %6 = tpu.matmul %0, %5, %cst_6 {dimension_numbers = #tpu.dot_dimension_numbers<[1], [0], [0], [1], [0, 0, 1, 1], [], []>} : vector<192x140xf32>, vector<140x192xf32>, vector<192x192xf32> -> vector<192x192xf32>
    %7 = arith.maximumf %3, %6 : vector<192x192xf32>
    %8 = vector.shape_cast %7 : vector<192x192xf32> to vector<12x16x192xf32>
    %9 = vector.extract_strided_slice %8 {offsets = [0, 0, 0], sizes = [12, 8, 192], strides = [1, 1, 1]} : vector<12x16x192xf32> to vector<12x8x192xf32>
    %10 = vector.extract_strided_slice %8 {offsets = [0, 8, 0], sizes = [12, 8, 192], strides = [1, 1, 1]} : vector<12x16x192xf32> to vector<12x8x192xf32>
    %11 = arith.maximumf %9, %10 : vector<12x8x192xf32>
    %12 = vector.shape_cast %11 : vector<12x8x192xf32> to vector<96x192xf32>
    %c0_7 = arith.constant 0 : index
    %c0_8 = arith.constant 0 : index
    %13 = vector.load %arg3[%c0_7, %c0_8] : memref<1x192xf32, #tpu.memory_space<vmem>>, vector<1x192xf32>
    %14 = vector.broadcast %13 : vector<1x192xf32> to vector<96x192xf32>
    %15 = arith.addf %12, %14 : vector<96x192xf32>
    %cst_9 = arith.constant 0.000000e+00 : f32
    %16 = vector.broadcast %cst_9 : f32 to vector<96x192xf32>
    %17 = arith.maximumf %15, %16 : vector<96x192xf32>
    %c0_10 = arith.constant 0 : index
    %c0_11 = arith.constant 0 : index
    %18 = vector.load %arg11[%c0_10, %c0_11] : memref<96x192xf32, #tpu.memory_space<vmem>>, vector<96x192xf32>
    tpu.vector_store %arg11[%c0_10, %c0_11], %17 {strides = array<i32>} : memref<96x192xf32, #tpu.memory_space<vmem>>, vector<96x192xf32>,
    %c0_12 = arith.constant 0 : index
    %c0_13 = arith.constant 0 : index
    %19 = vector.load %arg11[%c0_12, %c0_13] : memref<96x192xf32, #tpu.memory_space<vmem>>, vector<64x192xf32>
    %c0_14 = arith.constant 0 : index
    %c0_15 = arith.constant 0 : index
    %c0_16 = arith.constant 0 : index
    %20 = vector.load %arg4[%c0_14, %c0_15, %c0_16] : memref<5x192x256xf32, #tpu.memory_space<vmem>>, vector<1x192x256xf32>
    %21 = vector.shape_cast %20 : vector<1x192x256xf32> to vector<192x256xf32>
    %cst_17 = arith.constant dense<0.000000e+00> : vector<64x256xf32>
    %22 = tpu.matmul %19, %21, %cst_17 {dimension_numbers = #tpu.dot_dimension_numbers<[1], [0], [0], [1], [0, 0, 1, 1], [], []>} : vector<64x192xf32>, vector<192x256xf32>, vector<64x256xf32> -> vector<64x256xf32>
    %c8 = arith.constant 8 : index
    %c0_18 = arith.constant 0 : index
    %23 = vector.load %arg11[%c8, %c0_18] : memref<96x192xf32, #tpu.memory_space<vmem>>, vector<64x192xf32>
    %c1_19 = arith.constant 1 : index
    %c0_20 = arith.constant 0 : index
    %c0_21 = arith.constant 0 : index
    %24 = vector.load %arg4[%c1_19, %c0_20, %c0_21] : memref<5x192x256xf32, #tpu.memory_space<vmem>>, vector<1x192x256xf32>
    %25 = vector.shape_cast %24 : vector<1x192x256xf32> to vector<192x256xf32>
    %cst_22 = arith.constant dense<0.000000e+00> : vector<64x256xf32>
    %26 = tpu.matmul %23, %25, %cst_22 {dimension_numbers = #tpu.dot_dimension_numbers<[1], [0], [0], [1], [0, 0, 1, 1], [], []>} : vector<64x192xf32>, vector<192x256xf32>, vector<64x256xf32> -> vector<64x256xf32>
    %27 = arith.addf %22, %26 : vector<64x256xf32>
    %c16 = arith.constant 16 : index
    %c0_23 = arith.constant 0 : index
    %28 = vector.load %arg11[%c16, %c0_23] : memref<96x192xf32, #tpu.memory_space<vmem>>, vector<64x192xf32>
    %c2 = arith.constant 2 : index
    %c0_24 = arith.constant 0 : index
    %c0_25 = arith.constant 0 : index
    %29 = vector.load %arg4[%c2, %c0_24, %c0_25] : memref<5x192x256xf32, #tpu.memory_space<vmem>>, vector<1x192x256xf32>
    %30 = vector.shape_cast %29 : vector<1x192x256xf32> to vector<192x256xf32>
    %cst_26 = arith.constant dense<0.000000e+00> : vector<64x256xf32>
    %31 = tpu.matmul %28, %30, %cst_26 {dimension_numbers = #tpu.dot_dimension_numbers<[1], [0], [0], [1], [0, 0, 1, 1], [], []>} : vector<64x192xf32>, vector<192x256xf32>, vector<64x256xf32> -> vector<64x256xf32>
    %32 = arith.addf %27, %31 : vector<64x256xf32>
    %c24 = arith.constant 24 : index
    %c0_27 = arith.constant 0 : index
    %33 = vector.load %arg11[%c24, %c0_27] : memref<96x192xf32, #tpu.memory_space<vmem>>, vector<64x192xf32>
    %c3 = arith.constant 3 : index
    %c0_28 = arith.constant 0 : index
    %c0_29 = arith.constant 0 : index
    %34 = vector.load %arg4[%c3, %c0_28, %c0_29] : memref<5x192x256xf32, #tpu.memory_space<vmem>>, vector<1x192x256xf32>
    %35 = vector.shape_cast %34 : vector<1x192x256xf32> to vector<192x256xf32>
    %cst_30 = arith.constant dense<0.000000e+00> : vector<64x256xf32>
    %36 = tpu.matmul %33, %35, %cst_30 {dimension_numbers = #tpu.dot_dimension_numbers<[1], [0], [0], [1], [0, 0, 1, 1], [], []>} : vector<64x192xf32>, vector<192x256xf32>, vector<64x256xf32> -> vector<64x256xf32>
    %37 = arith.addf %32, %36 : vector<64x256xf32>
    %c32 = arith.constant 32 : index
    %c0_31 = arith.constant 0 : index
    %38 = vector.load %arg11[%c32, %c0_31] : memref<96x192xf32, #tpu.memory_space<vmem>>, vector<64x192xf32>
    %c4 = arith.constant 4 : index
    %c0_32 = arith.constant 0 : index
    %c0_33 = arith.constant 0 : index
    %39 = vector.load %arg4[%c4, %c0_32, %c0_33] : memref<5x192x256xf32, #tpu.memory_space<vmem>>, vector<1x192x256xf32>
    %40 = vector.shape_cast %39 : vector<1x192x256xf32> to vector<192x256xf32>
    %cst_34 = arith.constant dense<0.000000e+00> : vector<64x256xf32>
    %41 = tpu.matmul %38, %40, %cst_34 {dimension_numbers = #tpu.dot_dimension_numbers<[1], [0], [0], [1], [0, 0, 1, 1], [], []>} : vector<64x192xf32>, vector<192x256xf32>, vector<64x256xf32> -> vector<64x256xf32>
    %42 = arith.addf %37, %41 : vector<64x256xf32>
    %43 = vector.extract_strided_slice %42 {offsets = [0, 0], sizes = [64, 128], strides = [1, 1]} : vector<64x256xf32> to vector<64x128xf32>
    %44 = vector.extract_strided_slice %42 {offsets = [0, 128], sizes = [64, 128], strides = [1, 1]} : vector<64x256xf32> to vector<64x128xf32>
    %45 = arith.maximumf %43, %44 : vector<64x128xf32>
    %46 = vector.shape_cast %45 : vector<64x128xf32> to vector<4x16x128xf32>
    %47 = vector.extract_strided_slice %46 {offsets = [0, 0, 0], sizes = [4, 8, 128], strides = [1, 1, 1]} : vector<4x16x128xf32> to vector<4x8x128xf32>
    %48 = vector.extract_strided_slice %46 {offsets = [0, 8, 0], sizes = [4, 8, 128], strides = [1, 1, 1]} : vector<4x16x128xf32> to vector<4x8x128xf32>
    %49 = arith.maximumf %47, %48 : vector<4x8x128xf32>
    %50 = vector.shape_cast %49 : vector<4x8x128xf32> to vector<32x128xf32>
    %c0_35 = arith.constant 0 : index
    %c0_36 = arith.constant 0 : index
    %51 = vector.load %arg5[%c0_35, %c0_36] : memref<1x128xf32, #tpu.memory_space<vmem>>, vector<1x128xf32>
    %52 = vector.broadcast %51 : vector<1x128xf32> to vector<32x128xf32>
    %53 = arith.addf %50, %52 : vector<32x128xf32>
    %cst_37 = arith.constant 0.000000e+00 : f32
    %54 = vector.broadcast %cst_37 : f32 to vector<32x128xf32>
    %55 = arith.maximumf %53, %54 : vector<32x128xf32>
    %56 = vector.extract_strided_slice %55 {offsets = [0, 0], sizes = [8, 128], strides = [1, 1]} : vector<32x128xf32> to vector<8x128xf32>
    %c0_38 = arith.constant 0 : index
    %c0_39 = arith.constant 0 : index
    %c0_40 = arith.constant 0 : index
    %57 = vector.load %arg6[%c0_38, %c0_39, %c0_40] : memref<4x128x128xf32, #tpu.memory_space<vmem>>, vector<1x128x128xf32>
    %58 = vector.shape_cast %57 : vector<1x128x128xf32> to vector<128x128xf32>
    %cst_41 = arith.constant dense<0.000000e+00> : vector<8x128xf32>
    %59 = tpu.matmul %56, %58, %cst_41 {dimension_numbers = #tpu.dot_dimension_numbers<[1], [0], [0], [1], [0, 0, 1, 1], [], []>} : vector<8x128xf32>, vector<128x128xf32>, vector<8x128xf32> -> vector<8x128xf32>
    %60 = vector.extract_strided_slice %55 {offsets = [8, 0], sizes = [8, 128], strides = [1, 1]} : vector<32x128xf32> to vector<8x128xf32>
    %c1_42 = arith.constant 1 : index
    %c0_43 = arith.constant 0 : index
    %c0_44 = arith.constant 0 : index
    %61 = vector.load %arg6[%c1_42, %c0_43, %c0_44] : memref<4x128x128xf32, #tpu.memory_space<vmem>>, vector<1x128x128xf32>
    %62 = vector.shape_cast %61 : vector<1x128x128xf32> to vector<128x128xf32>
    %cst_45 = arith.constant dense<0.000000e+00> : vector<8x128xf32>
    %63 = tpu.matmul %60, %62, %cst_45 {dimension_numbers = #tpu.dot_dimension_numbers<[1], [0], [0], [1], [0, 0, 1, 1], [], []>} : vector<8x128xf32>, vector<128x128xf32>, vector<8x128xf32> -> vector<8x128xf32>
    %64 = arith.addf %59, %63 : vector<8x128xf32>
    %65 = vector.extract_strided_slice %55 {offsets = [16, 0], sizes = [8, 128], strides = [1, 1]} : vector<32x128xf32> to vector<8x128xf32>
    %c2_46 = arith.constant 2 : index
    %c0_47 = arith.constant 0 : index
    %c0_48 = arith.constant 0 : index
    %66 = vector.load %arg6[%c2_46, %c0_47, %c0_48] : memref<4x128x128xf32, #tpu.memory_space<vmem>>, vector<1x128x128xf32>
    %67 = vector.shape_cast %66 : vector<1x128x128xf32> to vector<128x128xf32>
    %cst_49 = arith.constant dense<0.000000e+00> : vector<8x128xf32>
    %68 = tpu.matmul %65, %67, %cst_49 {dimension_numbers = #tpu.dot_dimension_numbers<[1], [0], [0], [1], [0, 0, 1, 1], [], []>} : vector<8x128xf32>, vector<128x128xf32>, vector<8x128xf32> -> vector<8x128xf32>
    %69 = arith.addf %64, %68 : vector<8x128xf32>
    %70 = vector.extract_strided_slice %55 {offsets = [24, 0], sizes = [8, 128], strides = [1, 1]} : vector<32x128xf32> to vector<8x128xf32>
    %c3_50 = arith.constant 3 : index
    %c0_51 = arith.constant 0 : index
    %c0_52 = arith.constant 0 : index
    %71 = vector.load %arg6[%c3_50, %c0_51, %c0_52] : memref<4x128x128xf32, #tpu.memory_space<vmem>>, vector<1x128x128xf32>
    %72 = vector.shape_cast %71 : vector<1x128x128xf32> to vector<128x128xf32>
    %cst_53 = arith.constant dense<0.000000e+00> : vector<8x128xf32>
    %73 = tpu.matmul %70, %72, %cst_53 {dimension_numbers = #tpu.dot_dimension_numbers<[1], [0], [0], [1], [0, 0, 1, 1], [], []>} : vector<8x128xf32>, vector<128x128xf32>, vector<8x128xf32> -> vector<8x128xf32>
    %74 = arith.addf %69, %73 : vector<8x128xf32>
    %c0_54 = arith.constant 0 : index
    %c0_55 = arith.constant 0 : index
    %75 = vector.load %arg7[%c0_54, %c0_55] : memref<1x128xf32, #tpu.memory_space<vmem>>, vector<1x128xf32>
    %76 = vector.broadcast %75 : vector<1x128xf32> to vector<8x128xf32>
    %77 = arith.addf %74, %76 : vector<8x128xf32>
    %cst_56 = arith.constant 0.000000e+00 : f32
    %78 = vector.broadcast %cst_56 : f32 to vector<8x128xf32>
    %79 = arith.maximumf %77, %78 : vector<8x128xf32>
    %c0_57 = arith.constant 0 : index
    %c0_58 = arith.constant 0 : index
    %80 = vector.load %arg8[%c0_57, %c0_58] : memref<128x128xf32, #tpu.memory_space<vmem>>, vector<128x128xf32>
    %cst_59 = arith.constant dense<0.000000e+00> : vector<8x128xf32>
    %81 = tpu.matmul %79, %80, %cst_59 {dimension_numbers = #tpu.dot_dimension_numbers<[1], [0], [0], [1], [0, 0, 1, 1], [], []>} : vector<8x128xf32>, vector<128x128xf32>, vector<8x128xf32> -> vector<8x128xf32>
    %c0_60 = arith.constant 0 : index
    %c0_61 = arith.constant 0 : index
    %82 = vector.load %arg9[%c0_60, %c0_61] : memref<1x128xf32, #tpu.memory_space<vmem>>, vector<1x128xf32>
    %83 = vector.broadcast %82 : vector<1x128xf32> to vector<8x128xf32>
    %84 = arith.addf %81, %83 : vector<8x128xf32>
    %85 = tpu.iota {dimensions = array<i32: 1>} : vector<8x128xi32>
    %c10_i32 = arith.constant 10 : i32
    %86 = vector.broadcast %c10_i32 : i32 to vector<8x128xi32>
    %87 = arith.cmpi slt, %85, %86 : vector<8x128xi32>
    %cst_62 = arith.constant -1.000000e+30 : f32
    %88 = vector.broadcast %cst_62 : f32 to vector<8x128xf32>
    %89 = arith.select %87, %84, %88 : vector<8x128xi1>, vector<8x128xf32>
    %cst_63 = arith.constant dense<0xFF800000> : vector<8xf32>
    %90 = vector.multi_reduction <maximumf>, %89, %cst_63 [1] : vector<8x128xf32> to vector<8xf32>
    %91 = vector.shape_cast %90 : vector<8xf32> to vector<8x1xf32>
    %92 = vector.broadcast %91 : vector<8x1xf32> to vector<8x128xf32>
    %93 = arith.subf %89, %92 : vector<8x128xf32>
    %94 = math.exp %93 : vector<8x128xf32>
    %cst_64 = arith.constant 0.000000e+00 : f32
    %95 = vector.broadcast %cst_64 : f32 to vector<8x128xf32>
    %96 = arith.select %87, %94, %95 : vector<8x128xi1>, vector<8x128xf32>
    %cst_65 = arith.constant dense<0.000000e+00> : vector<8xf32>
    %97 = vector.multi_reduction <add>, %96, %cst_65 [1] : vector<8x128xf32> to vector<8xf32>
    %98 = vector.shape_cast %97 : vector<8xf32> to vector<8x1xf32>
    %99 = math.log %98 : vector<8x1xf32>
    %100 = vector.broadcast %91 : vector<8x1xf32> to vector<8x128xf32>
    %101 = arith.subf %89, %100 : vector<8x128xf32>
    %102 = vector.broadcast %99 : vector<8x1xf32> to vector<8x128xf32>
    %103 = arith.subf %101, %102 : vector<8x128xf32>
    %c0_66 = arith.constant 0 : index
    %c0_67 = arith.constant 0 : index
    %104 = vector.load %arg10[%c0_66, %c0_67] : memref<8x128xf32, #tpu.memory_space<vmem>>, vector<8x128xf32>
    tpu.vector_store %arg10[%c0_66, %c0_67], %103 {strides = array<i32>} : memref<8x128xf32, #tpu.memory_space<vmem>>, vector<8x128xf32>,
    return
  }
  func.func @transform_0(%arg0: i32) -> (i32, i32) {
    %c0_i32 = arith.constant 0 : i32
    %c0_i32_0 = arith.constant 0 : i32
    return %arg0, %c0_i32 : i32, i32
  }
  func.func @transform_1(%arg0: i32) -> (i32, i32, i32) {
    %c0_i32 = arith.constant 0 : i32
    %c0_i32_0 = arith.constant 0 : i32
    %c0_i32_1 = arith.constant 0 : i32
    %c0_i32_2 = arith.constant 0 : i32
    return %c0_i32, %c0_i32_0, %c0_i32_1 : i32, i32, i32
  }
  func.func @transform_2(%arg0: i32) -> (i32, i32) {
    %c0_i32 = arith.constant 0 : i32
    %c0_i32_0 = arith.constant 0 : i32
    %c0_i32_1 = arith.constant 0 : i32
    return %c0_i32, %c0_i32_0 : i32, i32
  }
  func.func @transform_3(%arg0: i32) -> (i32, i32, i32) {
    %c0_i32 = arith.constant 0 : i32
    %c0_i32_0 = arith.constant 0 : i32
    %c0_i32_1 = arith.constant 0 : i32
    %c0_i32_2 = arith.constant 0 : i32
    return %c0_i32, %c0_i32_0, %c0_i32_1 : i32, i32, i32
  }
  func.func @transform_4(%arg0: i32) -> (i32, i32) {
    %c0_i32 = arith.constant 0 : i32
    %c0_i32_0 = arith.constant 0 : i32
    %c0_i32_1 = arith.constant 0 : i32
    return %c0_i32, %c0_i32_0 : i32, i32
  }
  func.func @transform_5(%arg0: i32) -> (i32, i32, i32) {
    %c0_i32 = arith.constant 0 : i32
    %c0_i32_0 = arith.constant 0 : i32
    %c0_i32_1 = arith.constant 0 : i32
    %c0_i32_2 = arith.constant 0 : i32
    return %c0_i32, %c0_i32_0, %c0_i32_1 : i32, i32, i32
  }
  func.func @transform_6(%arg0: i32) -> (i32, i32) {
    %c0_i32 = arith.constant 0 : i32
    %c0_i32_0 = arith.constant 0 : i32
    %c0_i32_1 = arith.constant 0 : i32
    return %c0_i32, %c0_i32_0 : i32, i32
  }
  func.func @transform_7(%arg0: i32) -> (i32, i32) {
    %c0_i32 = arith.constant 0 : i32
    %c0_i32_0 = arith.constant 0 : i32
    %c0_i32_1 = arith.constant 0 : i32
    return %c0_i32, %c0_i32_0 : i32, i32
  }
  func.func @transform_8(%arg0: i32) -> (i32, i32) {
    %c0_i32 = arith.constant 0 : i32
    %c0_i32_0 = arith.constant 0 : i32
    %c0_i32_1 = arith.constant 0 : i32
    return %c0_i32, %c0_i32_0 : i32, i32
  }
  func.func @transform_9(%arg0: i32) -> (i32, i32) {
    %c0_i32 = arith.constant 0 : i32
    %c0_i32_0 = arith.constant 0 : i32
    return %arg0, %c0_i32 : i32, i32
  }
}

</mosaic_0001>

<bundles_post_ra>
// kernel: tile.13
= control target key start
LH: loop header
LB: loop body
LE: loop exit
PB: predicated region body
PF: predicated region fallthrough
CT: control target
= control target key end

     0   :  { %s28_s0 = inlined_call_operand.vmem [shape: f32[16], index: 0, kind: input, shape index: {}]   ;;  %s29_s1 = inlined_call_operand.vmem [shape: f32[12,16], index: 1, kind: output, shape index: {}]  }
   0x1   :  { %v4_v0 = vld [vmem:[%s28_s0] ss:$0 sm:$0xff] }
   0x2   :  { %5 = vst [vmem:[%s29_s1] sm:$0xff] %v4_v0  ;;  %8 = vst [vmem:[%s29_s1 + $0x8] sm:$0xff] %v4_v0 }

// kernel: tile.14
= control target key start
LH: loop header
LB: loop body
LE: loop exit
PB: predicated region body
PF: predicated region fallthrough
CT: control target
= control target key end

     0   :  { %s77_s10 = smov 112   ;;  %s78_s11 = smov 80   ;;  %vm4_vm0 = vcmask 130048   ;;  %vm10_vm1 = vcmask 1048448   ;;  %vm16_vm2 = vcmask 917248   ;;  %vm22_vm3 = vcmask 786048   ;;  %s124_s0 = inlined_call_operand.vmem [shape: f32[12,16], index: 0, kind: input, shape index: {}]   ;;  %s125_s1 = inlined_call_operand.vmem [shape: f32[1,192], index: 1, kind: output, shape index: {}]  }
   0x1   :  { %v62_v0 = vld [vmem:[%s124_s0 + $0x7] sm:$0x1]   ;;  %v64_v1 = vld [vmem:[%s124_s0 + $0x5] sm:$0x1]   ;;  %v63_v2 = vld [vmem:[%s124_s0 + $0x6] sm:$0x1]  }
   0x2   :  { %8 = vrot.lane.b32.xlu0 %v62_v0, %s77_s10  ;;  %20 = vrot.lane.b32.xlu1 %v64_v1, %s78_s11  ;;  %v65_v3 = vld [vmem:[%s124_s0 + $0x4] sm:$0x1]   ;;  %s31_s16 = smov 3  ;;  %s38_s17 = smov 3  ;;  %vm28_vm4 = vcmask 654848   ;;  %vm35_vm5 = vcmask 523648  }
   0x3   :  { %s79_s18 = smov 96   ;;  %s80_s19 = smov 64   ;;  %v66_v4 = vld [vmem:[%s124_s0 + $0x3] ss:$8 sm:%s31_s16]   ;;  %v67_v5 = vld [vmem:[%s124_s0 + $0x2] ss:$8 sm:%s38_s17]  }
   0x4   :  { %s2_s22 = smov 3  ;;  %s45_s27 = smov 3  ;;  %vm42_vm6 = vcmask 392448   ;;  %vm49_vm7 = vcmask 261248  }
   0x5   :  { %v3_v6 = vld [vmem:[%s124_s0] ss:$8 sm:%s2_s22]   ;;  %s81_s28 = smov 48   ;;  %s82_s29 = smov 32   ;;  %v68_v7 = vld [vmem:[%s124_s0 + $0x1] ss:$8 sm:%s45_s27]  }
   0x6   :  { %14 = vrot.lane.b32.xlu0 %v63_v2, %s79_s18  ;;  %26 = vrot.lane.b32.xlu1 %v65_v3, %s80_s19  ;;  %5 = vst.msk [vmem:[#allocation0] ss:$8 sm:$0x3] %vm4_vm0, %v3_v6   ;;  %s83_s0 = smov 16  }
   0xa   :  { %33 = vrot.lane.b32.xlu0 %v66_v4, %s81_s28  ;;  %40 = vrot.lane.b32.xlu1 %v67_v5, %s82_s29 }
   0xe   :  { %47 = vrot.lane.b32.xlu0 %v68_v7, %s83_s0 }
  0x74   :  { %v9_v8 = vpop.permute.xlu0 %8   ;;  %v21_v9 = vpop.permute.xlu1 %20  }
  0x75   :  { %11 = vst.msk [vmem:[#allocation0] sm:$0x1] %vm10_vm1, %v9_v8  }
  0x78   :  { %v15_v10 = vpop.permute.xlu0 %14   ;;  %v27_v11 = vpop.permute.xlu1 %26  }
  0x79   :  { %17 = vst.msk [vmem:[#allocation0] sm:$0x1] %vm16_vm2, %v15_v10  }
  0x7a   :  { %23 = vst.msk [vmem:[#allocation0] sm:$0x1] %vm22_vm3, %v21_v9  }
  0x7b   :  { %29 = vst.msk [vmem:[#allocation0] sm:$0x1] %vm28_vm4, %v27_v11  }
  0x7c   :  { %v34_v12 = vpop.permute.xlu0 %33   ;;  %v41_v13 = vpop.permute.xlu1 %40  }
  0x7d   :  { %36 = vst.msk [vmem:[#allocation0] ss:$8 sm:$0x3] %vm35_vm5, %v34_v12  }
  0x7e   :  { %43 = vst.msk [vmem:[#allocation0] ss:$8 sm:$0x3] %vm42_vm6, %v41_v13  }
  0x80   :  { %v48_v14 = vpop.permute.xlu0 %47  }
  0x81   :  { %50 = vst.msk [vmem:[#allocation0] ss:$8 sm:$0x3] %vm49_vm7, %v48_v14  }
  0x88   :  { %v54_v15 = vld [vmem:[#allocation0] sm:$0x1]  ;;  %v58_v16 = vld [vmem:[#allocation0 + $0x8] sm:$0x1] }
  0x89   :  { %56 = vst [vmem:[%s125_s1] sm:$0x1] %v54_v15  ;;  %69 = vst [vmem:[%s125_s1 + $0x1] sm:$0x1] %v58_v16 }

// kernel: tile.18
= control target key start
LH: loop header
LB: loop body
LE: loop exit
PB: predicated region body
PF: predicated region fallthrough
CT: control target
= control target key end

     0   :  { %s22_s0 = inlined_call_operand.vmem [shape: f32[32], index: 0, kind: input, shape index: {}]   ;;  %s23_s1 = inlined_call_operand.vmem [shape: f32[4,32], index: 1, kind: output, shape index: {}]  }
   0x1   :  { %v4_v0 = vld [vmem:[%s22_s0] ss:$0 sm:$0xff] }
   0x2   :  { %5 = vst [vmem:[%s23_s1] sm:$0xf] %v4_v0 }

// kernel: tile.19
= control target key start
LH: loop header
LB: loop body
LE: loop exit
PB: predicated region body
PF: predicated region fallthrough
CT: control target
= control target key end

     0   :  { %vm7_vm0 = vcmask 261120   ;;  %s37_s8 = smov 32   ;;  %s38_s9 = smov 64   ;;  %vm13_vm1 = vcmask 1048320   ;;  %vm19_vm2 = vcmask 785920   ;;  %vm25_vm3 = vcmask 523520   ;;  %s55_s0 = inlined_call_operand.vmem [shape: f32[4,32], index: 0, kind: input, shape index: {}]   ;;  %s56_s1 = inlined_call_operand.vmem [shape: f32[1,128], index: 1, kind: output, shape index: {}]  }
   0x1   :  { %v4_v0 = vld [vmem:[%s55_s0] sm:$0xf]  ;;  %s36_s0 = smov 96  }
   0x2   :  { %5 = vst [vmem:[#allocation1] sm:$0xf] %v4_v0 }
   0x9   :  { %v10_v1 = vld [vmem:[#allocation1 + $0x3] sm:$0x1]   ;;  %v22_v2 = vld [vmem:[#allocation1 + $0x1] sm:$0x1]   ;;  %v6_v3 = vld [vmem:[#allocation1] sm:$0x1]  }
   0xa   :  { %11 = vrot.lane.b32.xlu0 %v10_v1, %s36_s0  ;;  %23 = vrot.lane.b32.xlu1 %v22_v2, %s37_s8  ;;  %v16_v4 = vld [vmem:[#allocation1 + $0x2] sm:$0x1]   ;;  %8 = vst.msk [vmem:[#allocation0] sm:$0x1] %vm7_vm0, %v6_v3  }
   0xe   :  { %17 = vrot.lane.b32.xlu0 %v16_v4, %s38_s9 }
  0x7c   :  { %v12_v5 = vpop.permute.xlu0 %11   ;;  %v24_v6 = vpop.permute.xlu1 %23  }
  0x7d   :  { %14 = vst.msk [vmem:[#allocation0] sm:$0x1] %vm13_vm1, %v12_v5  }
  0x80   :  { %v18_v7 = vpop.permute.xlu0 %17  }
  0x81   :  { %20 = vst.msk [vmem:[#allocation0] sm:$0x1] %vm19_vm2, %v18_v7  }
  0x82   :  { %26 = vst.msk [vmem:[#allocation0] sm:$0x1] %vm25_vm3, %v24_v6  }
  0x89   :  { %v30_v8 = vld [vmem:[#allocation0] sm:$0x1] }
  0x8a   :  { %32 = vst [vmem:[%s56_s1] sm:$0x1] %v30_v8 }

// kernel: net_forward.1
= control target key start
LH: loop header
LB: loop body
LE: loop exit
PB: predicated region body
PF: predicated region fallthrough
CT: control target
= control target key end

     0   :  { %vm116_vm0 = vcmask 97280   ;;  %vm189_vm1 = vcmask 1043456   ;;  %vm3473_vm2 = vmmov 1   ;;  %vm790_vm4 = vcmask 523264   ;;  %s5170_s1 = inlined_call_operand.vmem [shape: f32[2,140,192], index: 1, kind: input, shape index: {}]   ;;  %s5171_s0 = inlined_call_operand.vmem [shape: f32[192,140], index: 0, kind: input, shape index: {}]   ;;  %s5172_s3 = inlined_call_operand.vmem [shape: f32[5,192,256], index: 3, kind: input, shape index: {}]   ;;  %s5173_s2 = inlined_call_operand.vmem [shape: f32[1,192], index: 2, kind: input, shape index: {}]   ;;  %s5174_s5 = inlined_call_operand.vmem [shape: f32[4,128,128], index: 5, kind: input, shape index: {}]   ;;  %s5175_s4 = inlined_call_operand.vmem [shape: f32[1,128], index: 4, kind: input, shape index: {}]   ;;  %s5176_s7 = inlined_call_operand.vmem [shape: f32[128,128], index: 7, kind: input, shape index: {}]   ;;  %s5177_s6 = inlined_call_operand.vmem [shape: f32[1,128], index: 6, kind: input, shape index: {}]   ;;  %s5178_s8 = inlined_call_operand.vmem [shape: f32[1,128], index: 8, kind: input, shape index: {}]   ;;  %s5179_s9 = inlined_call_operand.vmem [shape: f32[8,128], index: 9, kind: output, shape index: {}]  }
   0x1   :  { %v81_v0 = vld [vmem:[%s5170_s1 + $0x8] sm:$0xff]  ;;  %v83_v1 = vld [vmem:[%s5170_s1 + $0x18] sm:$0xff]  ;;  %v80_v5 = vld [vmem:[%s5170_s1] sm:$0xff]  ;;  %vm3475_vm5 = vmmov 0  }
   0x2   :  { %v2361_v2 = vld [vmem:[%s5170_s1 + $0x128] sm:$0xff]  ;;  %v2965_v3 = vpack.c.bf16 %v83_v1, %v81_v0  ;;  %v2363_v4 = vld [vmem:[%s5170_s1 + $0x138] sm:$0xff]  ;;  %v82_v6 = vld [vmem:[%s5170_s1 + $0x10] sm:$0xff] }
   0x3   :  { %v3003_v7 = vpack.c.bf16 %v2363_v4, %v2361_v2  ;;  %v2967_v8 = vpack.c.bf16 %v82_v6, %v80_v5  ;;  %v2360_v9 = vld [vmem:[%s5170_s1 + $0x120] sm:$0xff]  ;;  %v2362_v10 = vld [vmem:[%s5170_s1 + $0x130] sm:$0xff]  ;;  %v85_v11 = vld [vmem:[%s5170_s1 + $0x28] sm:$0xff] }
   0x4   :  { %2966 = vmatprep.subr.bf16.mxu0 %v2965_v3  ;;  %v3005_v12 = vpack.c.bf16 %v2362_v10, %v2360_v9  ;;  %v87_v13 = vld [vmem:[%s5170_s1 + $0x38] sm:$0xff]  ;;  %v2365_v14 = vld [vmem:[%s5170_s1 + $0x148] sm:$0xff]  ;;  %v84_v18 = vld [vmem:[%s5170_s1 + $0x20] sm:$0xff] }
   0x5   :  { %v2367_v15 = vld [vmem:[%s5170_s1 + $0x158] sm:$0xff]  ;;  %3004 = vmatprep.subr.bf16.mxu1 %v3003_v7  ;;  %2968 = vmatpush1.bf16.msra.mxu0 %v2967_v8  ;;  %v2969_v16 = vpack.c.bf16 %v87_v13, %v85_v11  ;;  %v86_v19 = vld [vmem:[%s5170_s1 + $0x30] sm:$0xff]  ;;  %v2364_v20 = vld [vmem:[%s5170_s1 + $0x140] sm:$0xff] }
   0x6   :  { %v3007_v17 = vpack.c.bf16 %v2367_v15, %v2365_v14  ;;  %3006 = vmatpush1.bf16.msra.mxu1 %v3005_v12  ;;  %v2971_v21 = vpack.c.bf16 %v86_v19, %v84_v18  ;;  %v2366_v22 = vld [vmem:[%s5170_s1 + $0x150] sm:$0xff]  ;;  %v89_v23 = vld [vmem:[%s5170_s1 + $0x48] sm:$0xff]  ;;  %v91_v24 = vld [vmem:[%s5170_s1 + $0x58] sm:$0xff] }
   0x7   :  { %2970 = vmatprep.subr.bf16.mxu0 %v2969_v16  ;;  %v3009_v25 = vpack.c.bf16 %v2366_v22, %v2364_v20  ;;  %v2973_v26 = vpack.c.bf16 %v91_v24, %v89_v23  ;;  %v2369_v27 = vld [vmem:[%s5170_s1 + $0x168] sm:$0xff]  ;;  %v2371_v28 = vld [vmem:[%s5170_s1 + $0x178] sm:$0xff]  ;;  %v88_v29 = vld [vmem:[%s5170_s1 + $0x40] sm:$0xff] }
   0x8   :  { %3008 = vmatprep.subr.bf16.mxu1 %v3007_v17  ;;  %v3011_v30 = vpack.c.bf16 %v2371_v28, %v2369_v27  ;;  %v90_v31 = vld [vmem:[%s5170_s1 + $0x50] sm:$0xff]  ;;  %v2368_v32 = vld [vmem:[%s5170_s1 + $0x160] sm:$0xff]  ;;  %v93_v35 = vld [vmem:[%s5170_s1 + $0x68] sm:$0xff] }
   0x9   :  { %v2370_v33 = vld [vmem:[%s5170_s1 + $0x170] sm:$0xff]  ;;  %2972 = vmatpush1.bf16.msra.mxu0 %v2971_v21  ;;  %v2975_v34 = vpack.c.bf16 %v90_v31, %v88_v29  ;;  %v95_v36 = vld [vmem:[%s5170_s1 + $0x78] sm:$0xff]  ;;  %v2373_v37 = vld [vmem:[%s5170_s1 + $0x188] sm:$0xff] }
   0xa   :  { %3010 = vmatpush1.bf16.msra.mxu1 %v3009_v25  ;;  %2974 = vmatprep.subr.bf16.mxu0 %v2973_v26  ;;  %v3013_v38 = vpack.c.bf16 %v2370_v33, %v2368_v32  ;;  %v2977_v39 = vpack.c.bf16 %v95_v36, %v93_v35  ;;  %v2375_v40 = vld [vmem:[%s5170_s1 + $0x198] sm:$0xff]  ;;  %v92_v41 = vld [vmem:[%s5170_s1 + $0x60] sm:$0xff]  ;;  %v94_v42 = vld [vmem:[%s5170_s1 + $0x70] sm:$0xff] }
   0xb   :  { %3012 = vmatprep.subr.bf16.mxu1 %v3011_v30  ;;  %v3015_v43 = vpack.c.bf16 %v2375_v40, %v2373_v37  ;;  %v2372_v44 = vld [vmem:[%s5170_s1 + $0x180] sm:$0xff]  ;;  %v2374_v45 = vld [vmem:[%s5170_s1 + $0x190] sm:$0xff]  ;;  %v97_v46 = vld [vmem:[%s5170_s1 + $0x88] sm:$0xff]  ;;  %v2979_v50 = vpack.c.bf16 %v94_v42, %v92_v41 }
   0xc   :  { %v99_v47 = vld [vmem:[%s5170_s1 + $0x98] sm:$0xff]  ;;  %v2377_v48 = vld [vmem:[%s5170_s1 + $0x1a8] sm:$0xff]  ;;  %v3017_v51 = vpack.c.bf16 %v2374_v45, %v2372_v44  ;;  %v96_v53 = vld [vmem:[%s5170_s1 + $0x80] sm:$0xff] }
   0xd   :  { %v2379_v49 = vld [vmem:[%s5170_s1 + $0x1b8] sm:$0xff]  ;;  %2976 = vmatpush1.bf16.msra.mxu0 %v2975_v34  ;;  %v2981_v52 = vpack.c.bf16 %v99_v47, %v97_v46  ;;  %v98_v54 = vld [vmem:[%s5170_s1 + $0x90] sm:$0xff]  ;;  %v2376_v55 = vld [vmem:[%s5170_s1 + $0x1a0] sm:$0xff] }
   0xe   :  { %3014 = vmatpush1.bf16.msra.mxu1 %v3013_v38  ;;  %2978 = vmatprep.subr.bf16.mxu0 %v2977_v39  ;;  %v3019_v56 = vpack.c.bf16 %v2379_v49, %v2377_v48  ;;  %v2378_v57 = vld [vmem:[%s5170_s1 + $0x1b0] sm:$0xff]  ;;  %v101_v58 = vld [vmem:[%s5170_s1 + $0xa8] sm:$0xff]  ;;  %v103_v59 = vld [vmem:[%s5170_s1 + $0xb8] sm:$0xff]  ;;  %v2983_v62 = vpack.c.bf16 %v98_v54, %v96_v53 }
   0xf   :  { %3016 = vmatprep.subr.bf16.mxu1 %v3015_v43  ;;  %v2381_v60 = vld [vmem:[%s5170_s1 + $0x1c8] sm:$0xff]  ;;  %v2383_v61 = vld [vmem:[%s5170_s1 + $0x1d8] sm:$0xff]  ;;  %v3021_v63 = vpack.c.bf16 %v2378_v57, %v2376_v55  ;;  %v2985_v0 = vpack.c.bf16 %v103_v59, %v101_v58  ;;  %v100_v1 = vld [vmem:[%s5170_s1 + $0xa0] sm:$0xff] }
  0x10   :  { %v102_v2 = vld [vmem:[%s5170_s1 + $0xb0] sm:$0xff]  ;;  %v2380_v3 = vld [vmem:[%s5170_s1 + $0x1c0] sm:$0xff]  ;;  %v3023_v4 = vpack.c.bf16 %v2383_v61, %v2381_v60  ;;  %v105_v6 = vld [vmem:[%s5170_s1 + $0xc8] sm:$0xff] }
  0x11   :  { %2980 = vmatpush1.bf16.msra.mxu0 %v2979_v50  ;;  %v2382_v5 = vld [vmem:[%s5170_s1 + $0x1d0] sm:$0xff]  ;;  %v107_v7 = vld [vmem:[%s5170_s1 + $0xd8] sm:$0xff]  ;;  %v2385_v8 = vld [vmem:[%s5170_s1 + $0x1e8] sm:$0xff]  ;;  %v2987_v10 = vpack.c.bf16 %v102_v2, %v100_v1 }
  0x12   :  { %3018 = vmatpush1.bf16.msra.mxu1 %v3017_v51  ;;  %2982 = vmatprep.subr.bf16.mxu0 %v2981_v52  ;;  %v2387_v9 = vld [vmem:[%s5170_s1 + $0x1f8] sm:$0xff]  ;;  %v3025_v11 = vpack.c.bf16 %v2382_v5, %v2380_v3  ;;  %v2989_v12 = vpack.c.bf16 %v107_v7, %v105_v6  ;;  %v104_v13 = vld [vmem:[%s5170_s1 + $0xc0] sm:$0xff]  ;;  %v106_v14 = vld [vmem:[%s5170_s1 + $0xd0] sm:$0xff] }
  0x13   :  { %3020 = vmatprep.subr.bf16.mxu1 %v3019_v56  ;;  %v2384_v15 = vld [vmem:[%s5170_s1 + $0x1e0] sm:$0xff]  ;;  %v3027_v16 = vpack.c.bf16 %v2387_v9, %v2385_v8  ;;  %v2386_v17 = vld [vmem:[%s5170_s1 + $0x1f0] sm:$0xff]  ;;  %v109_v18 = vld [vmem:[%s5170_s1 + $0xe8] sm:$0xff]  ;;  %v2991_v22 = vpack.c.bf16 %v106_v14, %v104_v13 }
  0x14   :  { %v111_v19 = vld [vmem:[%s5170_s1 + $0xf8] sm:$0xff]  ;;  %v2389_v20 = vld [vmem:[%s5170_s1 + $0x208] sm:$0xff]  ;;  %v3029_v24 = vpack.c.bf16 %v2386_v17, %v2384_v15  ;;  %v108_v26 = vld [vmem:[%s5170_s1 + $0xe0] sm:$0xff] }
  0x15   :  { %2984 = vmatpush1.bf16.msra.mxu0 %v2983_v62  ;;  %v2391_v21 = vld [vmem:[%s5170_s1 + $0x218] sm:$0xff]  ;;  %v33_v23 = vld [vmem:[%s5171_s0 + $0x8] sm:$0xff]  ;;  %v2993_v25 = vpack.c.bf16 %v111_v19, %v109_v18  ;;  %v110_v27 = vld [vmem:[%s5170_s1 + $0xf0] sm:$0xff] }
  0x16   :  { %3022 = vmatpush1.bf16.msra.mxu1 %v3021_v63  ;;  %2986 = vmatprep.subr.bf16.mxu0 %v2985_v0  ;;  %v2388_v28 = vld [vmem:[%s5170_s1 + $0x200] sm:$0xff]  ;;  %v3031_v29 = vpack.c.bf16 %v2391_v21, %v2389_v20  ;;  %v2390_v30 = vld [vmem:[%s5170_s1 + $0x210] sm:$0xff]  ;;  %v113_v31 = vld [vmem:[%s5170_s1 + $0x108] sm:$0xff]  ;;  %v2995_v35 = vpack.c.bf16 %v110_v27, %v108_v26 }
  0x17   :  { %3024 = vmatprep.subr.bf16.mxu1 %v3023_v4  ;;  %v115_v32 = vld [vmem:[%s5170_s1 + $0x118] sm:$0xf]  ;;  %2336 = vmatprep.mubr.msk.f32.mxu0 %vm116_vm0, %v33_v23  ;;  %v2393_v33 = vld [vmem:[%s5170_s1 + $0x228] sm:$0xff]  ;;  %v3033_v36 = vpack.c.bf16 %v2390_v30, %v2388_v28  ;;  %v112_v38 = vld [vmem:[%s5170_s1 + $0x100] sm:$0xff] }
  0x18   :  { %v2395_v34 = vld [vmem:[%s5170_s1 + $0x238] sm:$0xf]  ;;  %2398 = vmatprep.mubr.msk.f32.mxu1 %vm116_vm0, %v33_v23  ;;  %v2997_v37 = vpack.c.bf16 %v115_v32, %v113_v31  ;;  %v114_v39 = vld [vmem:[%s5170_s1 + $0x110] sm:$0xf]  ;;  %vm2998_vm3 = vmpackc.low %vm189_vm1, %vm3473_vm2 }
  0x19   :  { %2988 = vmatpush1.bf16.msra.mxu0 %v2987_v10  ;;  %v3035_v40 = vpack.c.bf16 %v2395_v34, %v2393_v33  ;;  %v2392_v41 = vld [vmem:[%s5170_s1 + $0x220] sm:$0xff]  ;;  %v2394_v42 = vld [vmem:[%s5170_s1 + $0x230] sm:$0xf]  ;;  %v3000_v43 = vpack.c.bf16 %v114_v39, %v112_v38  ;;  %v35_v46 = vld [vmem:[%s5171_s0 + $0x18] sm:$0xff] }
  0x1a   :  { %3026 = vmatpush1.bf16.msra.mxu1 %v3025_v11  ;;  %2990 = vmatprep.subr.bf16.mxu0 %v2989_v12  ;;  %v3038_v44 = vpack.c.bf16 %v2394_v42, %v2392_v41  ;;  %v32_v45 = vld [vmem:[%s5171_s0] sm:$0xff]  ;;  %v34_v47 = vld [vmem:[%s5171_s0 + $0x10] sm:$0xff]  ;;  %v831_v48 = vld [vmem:[%s5172_s3 + $0x8] sm:$0xff] }
  0x1b   :  { %3028 = vmatprep.subr.bf16.mxu1 %v3027_v16  ;;  %v833_v49 = vld [vmem:[%s5172_s3 + $0x18] sm:$0xff]  ;;  %v830_v50 = vld [vmem:[%s5172_s3] sm:$0xff]  ;;  %v832_v52 = vld [vmem:[%s5172_s3 + $0x10] sm:$0xff] }
  0x1c   :  { %v3089_v51 = vpack.c.bf16 %v833_v49, %v831_v48  ;;  %v835_v53 = vld [vmem:[%s5172_s3 + $0x28] sm:$0xff]  ;;  %v837_v54 = vld [vmem:[%s5172_s3 + $0x38] sm:$0xff]  ;;  %v3091_v56 = vpack.c.bf16 %v832_v52, %v830_v50  ;;  %v834_v58 = vld [vmem:[%s5172_s3 + $0x20] sm:$0xff] }
  0x1d   :  { %2992 = vmatpush1.bf16.msra.mxu0 %v2991_v22  ;;  %v37_v55 = vld [vmem:[%s5171_s0 + $0x28] sm:$0xff]  ;;  %v3093_v57 = vpack.c.bf16 %v837_v54, %v835_v53  ;;  %v836_v59 = vld [vmem:[%s5172_s3 + $0x30] sm:$0xff]  ;;  %v841_v61 = vld [vmem:[%s5172_s3 + $0x58] sm:$0xff] }
  0x1e   :  { %3030 = vmatpush1.bf16.msra.mxu1 %v3029_v24  ;;  %2994 = vmatprep.subr.bf16.mxu0 %v2993_v25  ;;  %v839_v60 = vld [vmem:[%s5172_s3 + $0x48] sm:$0xff]  ;;  %v36_v62 = vld [vmem:[%s5171_s0 + $0x20] sm:$0xff]  ;;  %v39_v63 = vld [vmem:[%s5171_s0 + $0x38] sm:$0xff]  ;;  %v3095_v0 = vpack.c.bf16 %v836_v59, %v834_v58 }
  0x1f   :  { %3032 = vmatprep.subr.bf16.mxu1 %v3031_v29  ;;  %v3097_v1 = vpack.c.bf16 %v841_v61, %v839_v60  ;;  %v838_v2 = vld [vmem:[%s5172_s3 + $0x40] sm:$0xff]  ;;  %v840_v3 = vld [vmem:[%s5172_s3 + $0x50] sm:$0xff]  ;;  %v843_v5 = vld [vmem:[%s5172_s3 + $0x68] sm:$0xff] }
  0x20   :  { %v38_v4 = vld [vmem:[%s5171_s0 + $0x30] sm:$0xff]  ;;  %v845_v6 = vld [vmem:[%s5172_s3 + $0x78] sm:$0xff]  ;;  %v41_v7 = vld [vmem:[%s5171_s0 + $0x48] sm:$0xff]  ;;  %v3099_v10 = vpack.c.bf16 %v840_v3, %v838_v2 }
  0x21   :  { %2996 = vmatpush1.bf16.msra.mxu0 %v2995_v35  ;;  %v2423_v8 = vld [vmem:[%s5172_s3 + $0x188] sm:$0xff]  ;;  %v2425_v9 = vld [vmem:[%s5172_s3 + $0x198] sm:$0xff]  ;;  %v842_v11 = vld [vmem:[%s5172_s3 + $0x60] sm:$0xff]  ;;  %v3101_v16 = vpack.c.bf16 %v845_v6, %v843_v5 }
  0x22   :  { %3034 = vmatpush1.bf16.msra.mxu1 %v3033_v36  ;;  %2999 = vmatprep.subr.msk.bf16.mxu0 %vm2998_vm3, %v2997_v37  ;;  %v3041_v12 = vpack.c.bf16 %v2425_v9, %v2423_v8  ;;  %v2422_v13 = vld [vmem:[%s5172_s3 + $0x180] sm:$0xff]  ;;  %v2424_v14 = vld [vmem:[%s5172_s3 + $0x190] sm:$0xff]  ;;  %v2427_v19 = vld [vmem:[%s5172_s3 + $0x1a8] sm:$0xff] }
  0x23   :  { %3037 = vmatprep.subr.msk.bf16.mxu1 %vm2998_vm3, %v3035_v40  ;;  %v40_v15 = vld [vmem:[%s5171_s0 + $0x40] sm:$0xff]  ;;  %v844_v17 = vld [vmem:[%s5172_s3 + $0x70] sm:$0xff]  ;;  %v3043_v18 = vpack.c.bf16 %v2424_v14, %v2422_v13  ;;  %v2429_v20 = vld [vmem:[%s5172_s3 + $0x1b8] sm:$0xff] }
  0x24   :  { %v847_v21 = vld [vmem:[%s5172_s3 + $0x88] sm:$0xff]  ;;  %v849_v22 = vld [vmem:[%s5172_s3 + $0x98] sm:$0xff]  ;;  %v3045_v23 = vpack.c.bf16 %v2429_v20, %v2427_v19  ;;  %v2426_v24 = vld [vmem:[%s5172_s3 + $0x1a0] sm:$0xff]  ;;  %v3103_v29 = vpack.c.bf16 %v844_v17, %v842_v11 }
  0x25   :  { %3002 = vmatpush1.bf16.msk.msra.mxu0 %vm2998_vm3, %v3000_v43  ;;  %v2428_v25 = vld [vmem:[%s5172_s3 + $0x1b0] sm:$0xff]  ;;  %v2431_v26 = vld [vmem:[%s5172_s3 + $0x1c8] sm:$0xff]  ;;  %v2433_v27 = vld [vmem:[%s5172_s3 + $0x1d8] sm:$0xff]  ;;  %v3105_v30 = vpack.c.bf16 %v849_v22, %v847_v21 }
  0x26   :  { %3040 = vmatpush1.bf16.msk.msra.mxu1 %vm2998_vm3, %v3038_v44  ;;  %3090 = vmatprep.subr.bf16.mxu0 %v3089_v51  ;;  %v43_v28 = vld [vmem:[%s5171_s0 + $0x58] sm:$0xff]  ;;  %v846_v31 = vld [vmem:[%s5172_s3 + $0x80] sm:$0xff]  ;;  %v848_v32 = vld [vmem:[%s5172_s3 + $0x90] sm:$0xff]  ;;  %v3047_v34 = vpack.c.bf16 %v2428_v25, %v2426_v24  ;;  %v3049_v36 = vpack.c.bf16 %v2433_v27, %v2431_v26 }
  0x27   :  { %3042 = vmatprep.subr.bf16.mxu1 %v3041_v12  ;;  %v851_v33 = vld [vmem:[%s5172_s3 + $0xa8] sm:$0xff]  ;;  %v853_v35 = vld [vmem:[%s5172_s3 + $0xb8] sm:$0xff]  ;;  %v2430_v37 = vld [vmem:[%s5172_s3 + $0x1c0] sm:$0xff]  ;;  %v3107_v43 = vpack.c.bf16 %v848_v32, %v846_v31 }
  0x28   :  { %261 = vmatmul.mubr.f32.vlgmr.msra.gmra.mrb[0].mxu0 %v32_v45  ;;  %v2432_v38 = vld [vmem:[%s5172_s3 + $0x1d0] sm:$0xff]  ;;  %v2435_v40 = vld [vmem:[%s5172_s3 + $0x1e8] sm:$0xff]  ;;  %v2437_v41 = vld [vmem:[%s5172_s3 + $0x1f8] sm:$0xff]  ;;  %v3109_v44 = vpack.c.bf16 %v853_v35, %v851_v33 }
  0x29   :  { %513 = vmatmul.mubr.f32.vlgmr.msra.gmra.mrb[0].mxu1 %v32_v45  ;;  %2337 = vmatprep.mubr.msk.f32.mxu0 %vm116_vm0, %v35_v46  ;;  %v42_v39 = vld [vmem:[%s5171_s0 + $0x50] sm:$0xff]  ;;  %v45_v42 = vld [vmem:[%s5171_s0 + $0x68] sm:$0xff]  ;;  %v850_v45 = vld [vmem:[%s5172_s3 + $0xa0] sm:$0xff]  ;;  %v3051_v48 = vpack.c.bf16 %v2432_v38, %v2430_v37  ;;  %v3053_v50 = vpack.c.bf16 %v2437_v41, %v2435_v40 }
  0x2a   :  { %2399 = vmatprep.mubr.msk.f32.mxu1 %vm116_vm0, %v35_v46  ;;  %3092 = vmatpush1.bf16.msra.mxu0 %v3091_v56  ;;  %v852_v46 = vld [vmem:[%s5172_s3 + $0xb0] sm:$0xff]  ;;  %v857_v49 = vld [vmem:[%s5172_s3 + $0xd8] sm:$0xff]  ;;  %v2434_v51 = vld [vmem:[%s5172_s3 + $0x1e0] sm:$0xff] }
  0x2b   :  { %3094 = vmatprep.subr.bf16.mxu0 %v3093_v57  ;;  %3044 = vmatpush1.bf16.msra.mxu1 %v3043_v18  ;;  %v2436_v52 = vld [vmem:[%s5172_s3 + $0x1f0] sm:$0xff]  ;;  %v44_v53 = vld [vmem:[%s5171_s0 + $0x60] sm:$0xff]  ;;  %v2439_v54 = vld [vmem:[%s5172_s3 + $0x208] sm:$0xff]  ;;  %v3111_v57 = vpack.c.bf16 %v852_v46, %v850_v45 }
  0x2c   :  { %267 = vmatmul.mubr.f32.gmra.mrb[2].mxu0 %v34_v47  ;;  %3046 = vmatprep.subr.bf16.mxu1 %v3045_v23  ;;  %v47_v56 = vld [vmem:[%s5171_s0 + $0x78] sm:$0xff]  ;;  %v854_v59 = vld [vmem:[%s5172_s3 + $0xc0] sm:$0xff]  ;;  %v856_v60 = vld [vmem:[%s5172_s3 + $0xd0] sm:$0xff]  ;;  %v3055_v61 = vpack.c.bf16 %v2436_v52, %v2434_v51 }
  0x2d   :  { %519 = vmatmul.mubr.f32.gmra.mrb[2].mxu1 %v34_v47  ;;  %2338 = vmatprep.mubr.msk.f32.mxu0 %vm116_vm0, %v37_v55  ;;  %v855_v47 = vld [vmem:[%s5172_s3 + $0xc8] sm:$0xff]  ;;  %v3115_v3 = vpack.c.bf16 %v856_v60, %v854_v59  ;;  %v858_v5 = vld [vmem:[%s5172_s3 + $0xe0] sm:$0xff]  ;;  %v860_v6 = vld [vmem:[%s5172_s3 + $0xf0] sm:$0xff] }
  0x2e   :  { %2400 = vmatprep.mubr.msk.f32.mxu1 %vm116_vm0, %v37_v55  ;;  %3096 = vmatpush1.bf16.msra.mxu0 %v3095_v0  ;;  %v2441_v55 = vld [vmem:[%s5172_s3 + $0x218] sm:$0xff]  ;;  %v3113_v58 = vpack.c.bf16 %v857_v49, %v855_v47  ;;  %v49_v2 = vld [vmem:[%s5171_s0 + $0x88] sm:$0xff]  ;;  %v3119_v9 = vpack.c.bf16 %v860_v6, %v858_v5  ;;  %v52_v12 = vld [vmem:[%s5171_s0 + $0xa0] sm:$0xff] }
  0x2f   :  { %3098 = vmatprep.subr.bf16.mxu0 %v3097_v1  ;;  %3048 = vmatpush1.bf16.msra.mxu1 %v3047_v34  ;;  %v3057_v0 = vpack.c.bf16 %v2441_v55, %v2439_v54  ;;  %v46_v1 = vld [vmem:[%s5171_s0 + $0x70] sm:$0xff]  ;;  %v51_v8 = vld [vmem:[%s5171_s0 + $0x98] sm:$0xff]  ;;  %v53_v11 = vld [vmem:[%s5171_s0 + $0xa8] sm:$0xff] }
  0x30   :  { %273 = vmatmul.mubr.f32.gmra.mrb[4].mxu0 %v36_v62  ;;  %3050 = vmatprep.subr.bf16.mxu1 %v3049_v36  ;;  %v55_v13 = vld [vmem:[%s5171_s0 + $0xb8] sm:$0xff]  ;;  %v54_v14 = vld [vmem:[%s5171_s0 + $0xb0] sm:$0xff]  ;;  %v61_v19 = vld [vmem:[%s5171_s0 + $0xe8] sm:$0xff] }
  0x31   :  { %525 = vmatmul.mubr.f32.gmra.mrb[4].mxu1 %v36_v62  ;;  %2339 = vmatprep.mubr.msk.f32.mxu0 %vm116_vm0, %v39_v63  ;;  %v859_v62 = vld [vmem:[%s5172_s3 + $0xe8] sm:$0xff]  ;;  %v59_v17 = vld [vmem:[%s5171_s0 + $0xd8] sm:$0xff]  ;;  %v58_v18 = vld [vmem:[%s5171_s0 + $0xd0] sm:$0xff] }
  0x32   :  { %2401 = vmatprep.mubr.msk.f32.mxu1 %vm116_vm0, %v39_v63  ;;  %3100 = vmatpush1.bf16.msra.mxu0 %v3099_v10  ;;  %v861_v63 = vld [vmem:[%s5172_s3 + $0xf8] sm:$0xff]  ;;  %v50_v10 = vld [vmem:[%s5171_s0 + $0x90] sm:$0xff]  ;;  %v60_v20 = vld [vmem:[%s5171_s0 + $0xe0] sm:$0xff] }
  0x33   :  { %3102 = vmatprep.subr.bf16.mxu0 %v3101_v16  ;;  %3052 = vmatpush1.bf16.msra.mxu1 %v3051_v48  ;;  %v56_v16 = vld [vmem:[%s5171_s0 + $0xc0] sm:$0xff]  ;;  %v63_v21 = vld [vmem:[%s5171_s0 + $0xf8] sm:$0xff]  ;;  %v62_v22 = vld [vmem:[%s5171_s0 + $0xf0] sm:$0xff] }
  0x34   :  { %279 = vmatmul.mubr.f32.gmra.mrb[6].mxu0 %v38_v4  ;;  %3054 = vmatprep.subr.bf16.mxu1 %v3053_v50  ;;  %v65_v23 = vld [vmem:[%s5171_s0 + $0x108] sm:$0xff]  ;;  %v64_v24 = vld [vmem:[%s5171_s0 + $0x100] sm:$0xff]  ;;  %v67_v25 = vld [vmem:[%s5171_s0 + $0x118] sm:$0xff] }
  0x35   :  { %531 = vmatmul.mubr.f32.gmra.mrb[6].mxu1 %v38_v4  ;;  %2340 = vmatprep.mubr.msk.f32.mxu0 %vm116_vm0, %v41_v7  ;;  %v3117_v4 = vpack.c.bf16 %v861_v63, %v859_v62  ;;  %v66_v26 = vld [vmem:[%s5171_s0 + $0x110] sm:$0xff]  ;;  %v69_v27 = vld [vmem:[%s5171_s0 + $0x128] sm:$0xff]  ;;  %v72_v32 = vld [vmem:[%s5171_s0 + $0x140] sm:$0xff] }
  0x36   :  { %2402 = vmatprep.mubr.msk.f32.mxu1 %vm116_vm0, %v41_v7  ;;  %3104 = vmatpush1.bf16.msra.mxu0 %v3103_v29  ;;  %v48_v7 = vld [vmem:[%s5171_s0 + $0x80] sm:$0xff]  ;;  %v71_v29 = vld [vmem:[%s5171_s0 + $0x138] sm:$0xff]  ;;  %v73_v31 = vld [vmem:[%s5171_s0 + $0x148] sm:$0xff] }
  0x37   :  { %3106 = vmatprep.subr.bf16.mxu0 %v3105_v30  ;;  %3056 = vmatpush1.bf16.msra.mxu1 %v3055_v61  ;;  %v70_v30 = vld [vmem:[%s5171_s0 + $0x130] sm:$0xff]  ;;  %v75_v33 = vld [vmem:[%s5171_s0 + $0x158] sm:$0xff]  ;;  %v2438_v35 = vld [vmem:[%s5172_s3 + $0x200] sm:$0xff] }
  0x38   :  { %285 = vmatmul.mubr.f32.gmra.mrb[8].mxu0 %v40_v15  ;;  %3058 = vmatprep.subr.bf16.mxu1 %v3057_v0  ;;  %v74_v34 = vld [vmem:[%s5171_s0 + $0x150] sm:$0xff]  ;;  %v77_v37 = vld [vmem:[%s5171_s0 + $0x168] sm:$0xff]  ;;  %v2445_v41 = vld [vmem:[%s5172_s3 + $0x238] sm:$0xff] }
  0x39   :  { %537 = vmatmul.mubr.f32.gmra.mrb[8].mxu1 %v40_v15  ;;  %2341 = vmatprep.mubr.msk.f32.mxu0 %vm116_vm0, %v43_v28  ;;  %v57_v15 = vld [vmem:[%s5171_s0 + $0xc8] sm:$0xff]  ;;  %v2440_v36 = vld [vmem:[%s5172_s3 + $0x210] sm:$0xff]  ;;  %v865_v47 = vld [vmem:[%s5172_s3 + $0x118] sm:$0xff] }
  0x3a   :  { %2403 = vmatprep.mubr.msk.f32.mxu1 %vm116_vm0, %v43_v28  ;;  %3108 = vmatpush1.bf16.msra.mxu0 %v3107_v43  ;;  %v68_v28 = vld [vmem:[%s5171_s0 + $0x120] sm:$0xff]  ;;  %v3059_v38 = vpack.c.bf16 %v2440_v36, %v2438_v35  ;;  %v2443_v40 = vld [vmem:[%s5172_s3 + $0x228] sm:$0xff]  ;;  %v2444_v45 = vld [vmem:[%s5172_s3 + $0x230] sm:$0xff] }
  0x3b   :  { %3110 = vmatprep.subr.bf16.mxu0 %v3109_v44  ;;  %v3061_v43 = vpack.c.bf16 %v2445_v41, %v2443_v40  ;;  %v2442_v44 = vld [vmem:[%s5172_s3 + $0x220] sm:$0xff]  ;;  %v863_v46 = vld [vmem:[%s5172_s3 + $0x108] sm:$0xff]  ;;  %v864_v51 = vld [vmem:[%s5172_s3 + $0x110] sm:$0xff] }
  0x3c   :  { %291 = vmatmul.mubr.f32.gmra.mrb[10].mxu0 %v42_v39  ;;  %3060 = vmatpush1.bf16.msra.mxu1 %v3059_v38  ;;  %v862_v48 = vld [vmem:[%s5172_s3 + $0x100] sm:$0xff]  ;;  %v3063_v49 = vpack.c.bf16 %v2444_v45, %v2442_v44  ;;  %v3121_v50 = vpack.c.bf16 %v865_v47, %v863_v46  ;;  %v2449_v54 = vld [vmem:[%s5172_s3 + $0x258] sm:$0xff]  ;;  %v78_v55 = vld [vmem:[%s5171_s0 + $0x170] sm:$0xff]  ;;  %v731_v47 = vlaneseq }
  0x3d   :  { %543 = vmatmul.mubr.f32.gmra.mrb[10].mxu1 %v42_v39  ;;  %2342 = vmatprep.mubr.msk.f32.mxu0 %vm116_vm0, %v45_v42  ;;  %v76_v39 = vld [vmem:[%s5171_s0 + $0x160] sm:$0xff]  ;;  %v3123_v52 = vpack.c.bf16 %v864_v51, %v862_v48  ;;  %v867_v60 = vld [vmem:[%s5172_s3 + $0x128] sm:$0xff]  ;;  %v869_v61 = vld [vmem:[%s5172_s3 + $0x138] sm:$0xff] }
  0x3e   :  { %2404 = vmatprep.mubr.msk.f32.mxu1 %vm116_vm0, %v45_v42  ;;  %3112 = vmatpush1.bf16.msra.mxu0 %v3111_v57  ;;  %v79_v42 = vld [vmem:[%s5171_s0 + $0x178] sm:$0xff]  ;;  %v2446_v57 = vld [vmem:[%s5172_s3 + $0x240] sm:$0xff]  ;;  %v2451_v62 = vld [vmem:[%s5172_s3 + $0x268] sm:$0xff]  ;;  %v3125_v63 = vpack.c.bf16 %v869_v61, %v867_v60  ;;  %v732_v48 = vshrl.u32 %v731_v47, 7 }
  0x3f   :  { %3114 = vmatprep.subr.bf16.mxu0 %v3113_v58  ;;  %3062 = vmatprep.subr.bf16.mxu1 %v3061_v43  ;;  %v2448_v58 = vld [vmem:[%s5172_s3 + $0x250] sm:$0xff]  ;;  %v2453_v0 = vld [vmem:[%s5172_s3 + $0x278] sm:$0xff]  ;;  %v2450_v5 = vld [vmem:[%s5172_s3 + $0x260] sm:$0xff] }
  0x40   :  { %297 = vmatmul.mubr.f32.gmra.mrb[12].mxu0 %v44_v53  ;;  %3064 = vmatpush1.bf16.msra.mxu1 %v3063_v49  ;;  %v3067_v59 = vpack.c.bf16 %v2448_v58, %v2446_v57  ;;  %v2452_v6 = vld [vmem:[%s5172_s3 + $0x270] sm:$0xff]  ;;  %v2462_v35 = vld [vmem:[%s5172_s3 + $0x2c0] sm:$0xff]  ;;  %v2467_v38 = vld [vmem:[%s5172_s3 + $0x2e8] sm:$0xff]  ;;  %v737_v57 = vsub.s32 1, %v732_v48 }
  0x41   :  { %549 = vmatmul.mubr.f32.gmra.mrb[12].mxu1 %v44_v53  ;;  %2343 = vmatprep.mubr.msk.f32.mxu0 %vm116_vm0, %v47_v56  ;;  %v2447_v53 = vld [vmem:[%s5172_s3 + $0x248] sm:$0xff]  ;;  %v2464_v36 = vld [vmem:[%s5172_s3 + $0x2d0] sm:$0xff]  ;;  %v2466_v41 = vld [vmem:[%s5172_s3 + $0x2e0] sm:$0xff] }
  0x42   :  { %2405 = vmatprep.mubr.msk.f32.mxu1 %vm116_vm0, %v47_v56  ;;  %3116 = vmatpush1.bf16.msra.mxu0 %v3115_v3  ;;  %v3065_v56 = vpack.c.bf16 %v2449_v54, %v2447_v53  ;;  %v3069_v3 = vpack.c.bf16 %v2453_v0, %v2451_v62  ;;  %v2487_v44 = vld [vmem:[%s5172_s3 + $0x308] sm:$0xff]  ;;  %v2489_v45 = vld [vmem:[%s5172_s3 + $0x318] sm:$0xff]  ;;  %v733_v54 = vsub.s32 0, %v732_v48 }
  0x43   :  { %3118 = vmatprep.subr.bf16.mxu0 %v3117_v4  ;;  %v3137_v46 = vpack.c.bf16 %v2489_v45, %v2487_v44  ;;  %v2490_v44 = vld [vmem:[%s5172_s3 + $0x320] sm:$0xff]  ;;  %v2492_v45 = vld [vmem:[%s5172_s3 + $0x330] sm:$0xff]  ;;  %v2495_v48 = vld [vmem:[%s5172_s3 + $0x348] sm:$0xff] }
  0x44   :  { %303 = vmatmul.mubr.f32.gmra.mrb[14].mxu0 %v46_v1  ;;  %3066 = vmatprep.subr.bf16.mxu1 %v3065_v56  ;;  %v729_v56 = vld [vmem:[%s5173_s2] sm:$0x3] }
  0x45   :  { %555 = vmatmul.mubr.f32.gmra.mrb[14].mxu1 %v46_v1  ;;  %2344 = vmatprep.mubr.msk.f32.mxu0 %vm116_vm0, %v49_v2  ;;  %v866_v1 = vld [vmem:[%s5172_s3 + $0x120] sm:$0xff]  ;;  %v4233_v62 = vrot.slane %v729_v56, %v733_v54 }
  0x46   :  { %2406 = vmatprep.mubr.msk.f32.mxu1 %vm116_vm0, %v49_v2  ;;  %3120 = vmatpush1.bf16.msra.mxu0 %v3119_v9  ;;  %v868_v2 = vld [vmem:[%s5172_s3 + $0x130] sm:$0xff]  ;;  %v2457_v9 = vld [vmem:[%s5172_s3 + $0x298] sm:$0xff] }
  0x47   :  { %3122 = vmatprep.subr.bf16.mxu0 %v3121_v50  ;;  %3068 = vmatpush1.bf16.msra.mxu1 %v3067_v59  ;;  %v3127_v4 = vpack.c.bf16 %v868_v2, %v866_v1  ;;  %v4235_v1 = vrot.slane %v729_v56, %v737_v57 }
  0x48   :  { %309 = vmatmul.mubr.f32.gmra.mrb[16].mxu0 %v48_v7  ;;  %3070 = vmatprep.subr.bf16.mxu1 %v3069_v3 }
  0x49   :  { %561 = vmatmul.mubr.f32.gmra.mrb[16].mxu1 %v48_v7  ;;  %2345 = vmatprep.mubr.msk.f32.mxu0 %vm116_vm0, %v51_v8  ;;  %v3071_v7 = vpack.c.bf16 %v2452_v6, %v2450_v5 }
  0x4a   :  { %2407 = vmatprep.mubr.msk.f32.mxu1 %vm116_vm0, %v51_v8  ;;  %3124 = vmatpush1.bf16.msra.mxu0 %v3123_v52  ;;  %v2455_v8 = vld [vmem:[%s5172_s3 + $0x288] sm:$0xff] }
  0x4b   :  { %3126 = vmatprep.subr.bf16.mxu0 %v3125_v63  ;;  %3072 = vmatpush1.bf16.msra.mxu1 %v3071_v7 }
  0x4c   :  { %315 = vmatmul.mubr.f32.gmra.mrb[18].mxu0 %v50_v10 }
  0x4d   :  { %567 = vmatmul.mubr.f32.gmra.mrb[18].mxu1 %v50_v10  ;;  %2346 = vmatprep.mubr.msk.f32.mxu0 %vm116_vm0, %v53_v11  ;;  %v871_v10 = vld [vmem:[%s5172_s3 + $0x148] sm:$0xff] }
  0x4e   :  { %2408 = vmatprep.mubr.msk.f32.mxu1 %vm116_vm0, %v53_v11  ;;  %3128 = vmatpush1.bf16.msra.mxu0 %v3127_v4  ;;  %v3073_v11 = vpack.c.bf16 %v2457_v9, %v2455_v8 }
  0x50   :  { %321 = vmatmul.mubr.f32.gmra.mrb[20].mxu0 %v52_v12  ;;  %3074 = vmatprep.subr.bf16.mxu1 %v3073_v11 }
  0x51   :  { %573 = vmatmul.mubr.f32.gmra.mrb[20].mxu1 %v52_v12  ;;  %2347 = vmatprep.mubr.msk.f32.mxu0 %vm116_vm0, %v55_v13  ;;  %v873_v12 = vld [vmem:[%s5172_s3 + $0x158] sm:$0xff] }
  0x52   :  { %2409 = vmatprep.mubr.msk.f32.mxu1 %vm116_vm0, %v55_v13  ;;  %v2454_v13 = vld [vmem:[%s5172_s3 + $0x280] sm:$0xff] }
  0x54   :  { %327 = vmatmul.mubr.f32.gmra.mrb[22].mxu0 %v54_v14 }
  0x55   :  { %579 = vmatmul.mubr.f32.gmra.mrb[22].mxu1 %v54_v14  ;;  %2348 = vmatprep.mubr.msk.f32.mxu0 %vm116_vm0, %v57_v15  ;;  %v2456_v14 = vld [vmem:[%s5172_s3 + $0x290] sm:$0xff] }
  0x56   :  { %2410 = vmatprep.mubr.msk.f32.mxu1 %vm116_vm0, %v57_v15  ;;  %v3129_v15 = vpack.c.bf16 %v873_v12, %v871_v10 }
  0x58   :  { %333 = vmatmul.mubr.f32.gmra.mrb[24].mxu0 %v56_v16  ;;  %3130 = vmatprep.subr.bf16.mxu0 %v3129_v15 }
  0x59   :  { %585 = vmatmul.mubr.f32.gmra.mrb[24].mxu1 %v56_v16  ;;  %2349 = vmatprep.mubr.msk.f32.mxu0 %vm116_vm0, %v59_v17  ;;  %v3075_v16 = vpack.c.bf16 %v2456_v14, %v2454_v13 }
  0x5a   :  { %2411 = vmatprep.mubr.msk.f32.mxu1 %vm116_vm0, %v59_v17  ;;  %v870_v17 = vld [vmem:[%s5172_s3 + $0x140] sm:$0xff] }
  0x5b   :  { %3076 = vmatpush1.bf16.msra.mxu1 %v3075_v16 }
  0x5c   :  { %339 = vmatmul.mubr.f32.gmra.mrb[26].mxu0 %v58_v18 }
  0x5d   :  { %591 = vmatmul.mubr.f32.gmra.mrb[26].mxu1 %v58_v18  ;;  %2350 = vmatprep.mubr.msk.f32.mxu0 %vm116_vm0, %v61_v19  ;;  %v872_v18 = vld [vmem:[%s5172_s3 + $0x150] sm:$0xff] }
  0x5e   :  { %2412 = vmatprep.mubr.msk.f32.mxu1 %vm116_vm0, %v61_v19  ;;  %v3131_v19 = vpack.c.bf16 %v872_v18, %v870_v17 }
  0x60   :  { %345 = vmatmul.mubr.f32.gmra.mrb[28].mxu0 %v60_v20 }
  0x61   :  { %597 = vmatmul.mubr.f32.gmra.mrb[28].mxu1 %v60_v20  ;;  %2351 = vmatprep.mubr.msk.f32.mxu0 %vm116_vm0, %v63_v21  ;;  %v2459_v20 = vld [vmem:[%s5172_s3 + $0x2a8] sm:$0xff] }
  0x62   :  { %2413 = vmatprep.mubr.msk.f32.mxu1 %vm116_vm0, %v63_v21  ;;  %v2461_v21 = vld [vmem:[%s5172_s3 + $0x2b8] sm:$0xff]  ;;  %3132 = vmatpush1.bf16.msra.mxu0 %v3131_v19 }
  0x64   :  { %351 = vmatmul.mubr.f32.gmra.mrb[30].mxu0 %v62_v22 }
  0x65   :  { %603 = vmatmul.mubr.f32.gmra.mrb[30].mxu1 %v62_v22  ;;  %2352 = vmatprep.mubr.msk.f32.mxu0 %vm116_vm0, %v65_v23  ;;  %v875_v22 = vld [vmem:[%s5172_s3 + $0x168] sm:$0xff] }
  0x66   :  { %2414 = vmatprep.mubr.msk.f32.mxu1 %vm116_vm0, %v65_v23  ;;  %v3077_v23 = vpack.c.bf16 %v2461_v21, %v2459_v20 }
  0x68   :  { %357 = vmatmul.mubr.f32.gmra.mrb[32].mxu0 %v64_v24  ;;  %3078 = vmatprep.subr.bf16.mxu1 %v3077_v23 }
  0x69   :  { %609 = vmatmul.mubr.f32.gmra.mrb[32].mxu1 %v64_v24  ;;  %2353 = vmatprep.mubr.msk.f32.mxu0 %vm116_vm0, %v67_v25  ;;  %v877_v24 = vld [vmem:[%s5172_s3 + $0x178] sm:$0xff] }
  0x6a   :  { %2415 = vmatprep.mubr.msk.f32.mxu1 %vm116_vm0, %v67_v25  ;;  %v2458_v25 = vld [vmem:[%s5172_s3 + $0x2a0] sm:$0xff] }
  0x6c   :  { %363 = vmatmul.mubr.f32.gmra.mrb[34].mxu0 %v66_v26 }
  0x6d   :  { %615 = vmatmul.mubr.f32.gmra.mrb[34].mxu1 %v66_v26  ;;  %2354 = vmatprep.mubr.msk.f32.mxu0 %vm116_vm0, %v69_v27  ;;  %v2460_v26 = vld [vmem:[%s5172_s3 + $0x2b0] sm:$0xff] }
  0x6e   :  { %2416 = vmatprep.mubr.msk.f32.mxu1 %vm116_vm0, %v69_v27  ;;  %v3133_v27 = vpack.c.bf16 %v877_v24, %v875_v22 }
  0x70   :  { %369 = vmatmul.mubr.f32.gmra.mrb[36].mxu0 %v68_v28  ;;  %3134 = vmatprep.subr.bf16.mxu0 %v3133_v27 }
  0x71   :  { %621 = vmatmul.mubr.f32.gmra.mrb[36].mxu1 %v68_v28  ;;  %2355 = vmatprep.mubr.msk.f32.mxu0 %vm116_vm0, %v71_v29  ;;  %v3079_v28 = vpack.c.bf16 %v2460_v26, %v2458_v25 }
  0x72   :  { %2417 = vmatprep.mubr.msk.f32.mxu1 %vm116_vm0, %v71_v29  ;;  %v874_v29 = vld [vmem:[%s5172_s3 + $0x160] sm:$0xff] }
  0x73   :  { %3080 = vmatpush1.bf16.msra.mxu1 %v3079_v28  ;;  %v2486_v28 = vld [vmem:[%s5172_s3 + $0x300] sm:$0xff] }
  0x74   :  { %375 = vmatmul.mubr.f32.gmra.mrb[38].mxu0 %v70_v30 }
  0x75   :  { %627 = vmatmul.mubr.f32.gmra.mrb[38].mxu1 %v70_v30  ;;  %2356 = vmatprep.mubr.msk.f32.mxu0 %vm116_vm0, %v73_v31  ;;  %v876_v30 = vld [vmem:[%s5172_s3 + $0x170] sm:$0xff] }
  0x76   :  { %2418 = vmatprep.mubr.msk.f32.mxu1 %vm116_vm0, %v73_v31  ;;  %v3135_v31 = vpack.c.bf16 %v876_v30, %v874_v29  ;;  %v2488_v29 = vld [vmem:[%s5172_s3 + $0x310] sm:$0xff] }
  0x78   :  { %381 = vmatmul.mubr.f32.gmra.mrb[40].mxu0 %v72_v32 }
  0x79   :  { %633 = vmatmul.mubr.f32.gmra.mrb[40].mxu1 %v72_v32  ;;  %2357 = vmatprep.mubr.msk.f32.mxu0 %vm116_vm0, %v75_v33  ;;  %v2463_v32 = vld [vmem:[%s5172_s3 + $0x2c8] sm:$0xff] }
  0x7a   :  { %2419 = vmatprep.mubr.msk.f32.mxu1 %vm116_vm0, %v75_v33  ;;  %v2465_v33 = vld [vmem:[%s5172_s3 + $0x2d8] sm:$0xff]  ;;  %3136 = vmatpush1.bf16.msra.mxu0 %v3135_v31 }
  0x7b   :  { %3138 = vmatprep.subr.bf16.mxu0 %v3137_v46 }
  0x7c   :  { %387 = vmatmul.mubr.f32.gmra.mrb[42].mxu0 %v74_v34 }
  0x7d   :  { %639 = vmatmul.mubr.f32.gmra.mrb[42].mxu1 %v74_v34  ;;  %2358 = vmatprep.mubr.msk.f32.mxu0 %vm116_vm0, %v77_v37  ;;  %v3081_v34 = vpack.c.bf16 %v2465_v33, %v2463_v32  ;;  %v2491_v32 = vld [vmem:[%s5172_s3 + $0x328] sm:$0xff]  ;;  %v2493_v33 = vld [vmem:[%s5172_s3 + $0x338] sm:$0xff] }
  0x7e   :  { %2420 = vmatprep.mubr.msk.f32.mxu1 %vm116_vm0, %v77_v37  ;;  %v3083_v37 = vpack.c.bf16 %v2464_v36, %v2462_v35 }
  0x7f   :  { %3082 = vmatprep.subr.bf16.mxu1 %v3081_v34 }
  0x80   :  { %393 = vmatmul.mubr.f32.gmra.mrb[44].mxu0 %v76_v39  ;;  %3084 = vmatpush1.bf16.msra.mxu1 %v3083_v37 }
  0x81   :  { %645 = vmatmul.mubr.f32.gmra.mrb[44].mxu1 %v76_v39  ;;  %2359 = vmatprep.mubr.msk.f32.mxu0 %vm116_vm0, %v79_v42  ;;  %v2469_v39 = vld [vmem:[%s5172_s3 + $0x2f8] sm:$0xff] }
  0x82   :  { %2421 = vmatprep.mubr.msk.f32.mxu1 %vm116_vm0, %v79_v42  ;;  %v3085_v40 = vpack.c.bf16 %v2469_v39, %v2467_v38  ;;  %v2468_v42 = vld [vmem:[%s5172_s3 + $0x2f0] sm:$0xff]  ;;  %v3139_v39 = vpack.c.bf16 %v2488_v29, %v2486_v28  ;;  %v2502_v29 = vld [vmem:[%s5172_s3 + $0x380] sm:$0xff] }
  0x83   :  { %v3087_v43 = vpack.c.bf16 %v2468_v42, %v2466_v41 }
  0x84   :  { %399 = vmatmul.mubr.f32.gmra.mrb[46].mxu0 %v78_v55  ;;  %3086 = vmatprep.subr.bf16.mxu1 %v3085_v40 }
  0x85   :  { %651 = vmatmul.mubr.f32.gmra.mrb[46].mxu1 %v78_v55 }
  0x86   :  { %3088 = vmatpush1.bf16.msra.mxu1 %v3087_v43  ;;  %v3141_v43 = vpack.c.bf16 %v2493_v33, %v2491_v32  ;;  %v2507_v33 = vld [vmem:[%s5172_s3 + $0x3a8] sm:$0xff] }
  0xfb   :  { %v262_v49 = vpop.f32.mrb[0].mxu0 }
  0xfc   :  { %v514_v50 = vpop.f32.mrb[0].mxu1  ;;  %v264_v51 = vpop.f32.mrb[1].mxu0 }
  0xfd   :  { %v657_v52 = vmax.f32 %v262_v49, %v514_v50  ;;  %v516_v53 = vpop.f32.mrb[1].mxu1  ;;  %v2497_v49 = vld [vmem:[%s5172_s3 + $0x358] sm:$0xff] }
  0xfe   :  { %v658_v55 = vmax.f32 %v264_v51, %v516_v53 }
  0xff   :  { %v268_v58 = vpop.f32.mrb[2].mxu0 }
 0x100   :  { %v520_v59 = vpop.f32.mrb[2].mxu1  ;;  %v270_v60 = vpop.f32.mrb[3].mxu0 }
 0x101   :  { %v659_v61 = vmax.f32 %v268_v58, %v520_v59  ;;  %v522_v63 = vpop.f32.mrb[3].mxu1  ;;  %v3145_v59 = vpack.c.bf16 %v2497_v49, %v2495_v48  ;;  %v2511_v49 = vld [vmem:[%s5172_s3 + $0x3c8] sm:$0xff] }
 0x102   :  { %v660_v0 = vmax.f32 %v270_v60, %v522_v63  ;;  %v2494_v60 = vld [vmem:[%s5172_s3 + $0x340] sm:$0xff] }
 0x103   :  { %v705_v2 = vmax.f32 %v657_v52, %v659_v61  ;;  %v274_v3 = vpop.f32.mrb[4].mxu0  ;;  %v2496_v61 = vld [vmem:[%s5172_s3 + $0x350] sm:$0xff] }
 0x104   :  { %v706_v4 = vmax.f32 %v658_v55, %v660_v0  ;;  %v526_v5 = vpop.f32.mrb[4].mxu1  ;;  %v276_v6 = vpop.f32.mrb[5].mxu0  ;;  %v3143_v55 = vpack.c.bf16 %v2492_v45, %v2490_v44  ;;  %v2506_v45 = vld [vmem:[%s5172_s3 + $0x3a0] sm:$0xff] }
 0x105   :  { %v741_v7 = vadd.f32 %v4233_v62, %v705_v2  ;;  %v661_v8 = vmax.f32 %v274_v3, %v526_v5  ;;  %v528_v9 = vpop.f32.mrb[5].mxu1  ;;  %v2499_v2 = vld [vmem:[%s5172_s3 + $0x368] sm:$0xff]  ;;  %v2501_v3 = vld [vmem:[%s5172_s3 + $0x378] sm:$0xff] }
 0x106   :  { %v742_v10 = vadd.f32 %v4235_v1, %v706_v4  ;;  %v662_v11 = vmax.f32 %v276_v6, %v528_v9  ;;  %v3147_v9 = vpack.c.bf16 %v2496_v61, %v2494_v60  ;;  %v2510_v61 = vld [vmem:[%s5172_s3 + $0x3c0] sm:$0xff] }
 0x107   :  { %v765_v12 = vmax.f32 %v741_v7, 0.0  ;;  %v280_v13 = vpop.f32.mrb[6].mxu0 }
 0x108   :  { %v766_v14 = vmax.f32 %v742_v10, 0.0  ;;  %v532_v15 = vpop.f32.mrb[6].mxu1  ;;  %v282_v16 = vpop.f32.mrb[7].mxu0 }
 0x109   :  { %v663_v17 = vmax.f32 %v280_v13, %v532_v15  ;;  %v534_v18 = vpop.f32.mrb[7].mxu1  ;;  %v3149_v13 = vpack.c.bf16 %v2501_v3, %v2499_v2  ;;  %v2500_v15 = vld [vmem:[%s5172_s3 + $0x370] sm:$0xff]  ;;  %v2515_v3 = vld [vmem:[%s5172_s3 + $0x3e8] sm:$0xff] }
 0x10a   :  { %791 = vst.msk [vmem:[#allocation2 + $0x8] sm:$0xff] %vm790_vm4, %v766_v14  ;;  %v664_v19 = vmax.f32 %v282_v16, %v534_v18  ;;  %v2498_v14 = vld [vmem:[%s5172_s3 + $0x360] sm:$0xff]  ;;  %v2505_v18 = vld [vmem:[%s5172_s3 + $0x398] sm:$0xff] }
 0x10b   :  { %v707_v20 = vmax.f32 %v661_v8, %v663_v17  ;;  %v286_v21 = vpop.f32.mrb[8].mxu0  ;;  %v2503_v17 = vld [vmem:[%s5172_s3 + $0x388] sm:$0xff] }
 0x10c   :  { %v708_v22 = vmax.f32 %v662_v11, %v664_v19  ;;  %v538_v23 = vpop.f32.mrb[8].mxu1  ;;  %v288_v24 = vpop.f32.mrb[9].mxu0  ;;  %v3153_v28 = vpack.c.bf16 %v2505_v18, %v2503_v17  ;;  %v2516_v17 = vld [vmem:[%s5172_s3 + $0x3f0] sm:$0xff] }
 0x10d   :  { %v4241_v25 = vadd.f32 %v4233_v62, %v707_v20  ;;  %v665_v26 = vmax.f32 %v286_v21, %v538_v23  ;;  %v540_v27 = vpop.f32.mrb[9].mxu1 }
 0x10e   :  { %v744_v30 = vadd.f32 %v4235_v1, %v708_v22  ;;  %v666_v31 = vmax.f32 %v288_v24, %v540_v27  ;;  %v3151_v24 = vpack.c.bf16 %v2500_v15, %v2498_v14 }
 0x10f   :  { %v767_v34 = vmax.f32 %v4241_v25, 0.0  ;;  %v292_v35 = vpop.f32.mrb[10].mxu0 }
 0x110   :  { %v768_v36 = vmax.f32 %v744_v30, 0.0  ;;  %v544_v37 = vpop.f32.mrb[10].mxu1  ;;  %v294_v38 = vpop.f32.mrb[11].mxu0  ;;  %v2504_v30 = vld [vmem:[%s5172_s3 + $0x390] sm:$0xff] }
 0x111   :  { %v667_v40 = vmax.f32 %v292_v35, %v544_v37  ;;  %v546_v41 = vpop.f32.mrb[11].mxu1  ;;  %v815_v42 = vld [vmem:[#allocation2 + $0x8] sm:$0xff] }
 0x112   :  { %793 = vst.msk [vmem:[#allocation2 + $0x18] sm:$0xff] %vm790_vm4, %v768_v36  ;;  %v668_v46 = vmax.f32 %v294_v38, %v546_v41  ;;  %2478 = vmatprep.mubr.msk.f32.mxu0 %vm790_vm4, %v815_v42 }
 0x113   :  { %v709_v50 = vmax.f32 %v665_v26, %v667_v40  ;;  %1134 = vmatmul.mubr.f32.vlgmr.msra.gmra.mrb[48].mxu0 %v765_v12  ;;  %v298_v51 = vpop.f32.mrb[12].mxu0  ;;  %v3155_v40 = vpack.c.bf16 %v2504_v30, %v2502_v29 }
 0x114   :  { %v710_v52 = vmax.f32 %v666_v31, %v668_v46  ;;  %v550_v53 = vpop.f32.mrb[12].mxu1  ;;  %v300_v54 = vpop.f32.mrb[13].mxu0  ;;  %3140 = vmatpush1.bf16.msra.mxu0 %v3139_v39  ;;  %v2508_v46 = vld [vmem:[%s5172_s3 + $0x3b0] sm:$0xff] }
 0x115   :  { %v745_v56 = vadd.f32 %v4233_v62, %v709_v50  ;;  %v669_v57 = vmax.f32 %v298_v51, %v550_v53  ;;  %v552_v58 = vpop.f32.mrb[13].mxu1  ;;  %3142 = vmatprep.subr.bf16.mxu0 %v3141_v43  ;;  %v2513_v50 = vld [vmem:[%s5172_s3 + $0x3d8] sm:$0xff] }
 0x116   :  { %v746_v63 = vadd.f32 %v4235_v1, %v710_v52  ;;  %v670_v0 = vmax.f32 %v300_v54, %v552_v58  ;;  %v3161_v60 = vpack.c.bf16 %v2513_v50, %v2511_v49  ;;  %v2522_v50 = vld [vmem:[%s5172_s3 + $0x420] sm:$0xff] }
 0x117   :  { %v4285_v4 = vmax.f32 %v745_v56, 0.0  ;;  %v304_v5 = vpop.f32.mrb[14].mxu0  ;;  %v3159_v56 = vpack.c.bf16 %v2508_v46, %v2506_v45 }
 0x118   :  { %v770_v6 = vmax.f32 %v746_v63, 0.0  ;;  %v556_v7 = vpop.f32.mrb[14].mxu1  ;;  %v306_v8 = vpop.f32.mrb[15].mxu0  ;;  %3144 = vmatpush1.bf16.msra.mxu0 %v3143_v55  ;;  %v2512_v63 = vld [vmem:[%s5172_s3 + $0x3d0] sm:$0xff] }
 0x119   :  { %v671_v10 = vmax.f32 %v304_v5, %v556_v7  ;;  %v558_v11 = vpop.f32.mrb[15].mxu1  ;;  %v817_v12 = vld [vmem:[#allocation2 + $0x18] sm:$0xff]  ;;  %3146 = vmatprep.subr.bf16.mxu0 %v3145_v59 }
 0x11a   :  { %795 = vst.msk [vmem:[#allocation2 + $0x28] sm:$0xff] %vm790_vm4, %v770_v6  ;;  %v672_v16 = vmax.f32 %v306_v8, %v558_v11  ;;  %2470 = vmatprep.mubr.msk.f32.mxu1 %vm790_vm4, %v817_v12  ;;  %2479 = vmatprep.mubr.msk.f32.mxu0 %vm790_vm4, %v817_v12  ;;  %v2517_v5 = vld [vmem:[%s5172_s3 + $0x3f8] sm:$0xff]  ;;  %v3163_v11 = vpack.c.bf16 %v2512_v63, %v2510_v61 }
 0x11b   :  { %v711_v19 = vmax.f32 %v669_v57, %v671_v10  ;;  %1018 = vmatmul.mubr.f32.vlgmr.msra.gmra.mrb[48].mxu1 %v767_v34  ;;  %1140 = vmatmul.mubr.f32.gmra.mrb[50].mxu0 %v767_v34  ;;  %v310_v20 = vpop.f32.mrb[16].mxu0  ;;  %v2509_v34 = vld [vmem:[%s5172_s3 + $0x3b8] sm:$0xff]  ;;  %v3165_v15 = vpack.c.bf16 %v2517_v5, %v2515_v3  ;;  %v2526_v3 = vld [vmem:[%s5172_s3 + $0x440] sm:$0xff]  ;;  %v2528_v5 = vld [vmem:[%s5172_s3 + $0x450] sm:$0xff] }
 0x11c   :  { %v712_v21 = vmax.f32 %v670_v0, %v672_v16  ;;  %v562_v22 = vpop.f32.mrb[16].mxu1  ;;  %v312_v23 = vpop.f32.mrb[17].mxu0  ;;  %3148 = vmatpush1.bf16.msra.mxu0 %v3147_v9  ;;  %v3157_v44 = vpack.c.bf16 %v2509_v34, %v2507_v33  ;;  %v2514_v16 = vld [vmem:[%s5172_s3 + $0x3e0] sm:$0xff] }
 0x11d   :  { %v747_v25 = vadd.f32 %v4233_v62, %v711_v19  ;;  %v673_v26 = vmax.f32 %v310_v20, %v562_v22  ;;  %v564_v27 = vpop.f32.mrb[17].mxu1  ;;  %3150 = vmatprep.subr.bf16.mxu0 %v3149_v13  ;;  %v2519_v19 = vld [vmem:[%s5172_s3 + $0x408] sm:$0xff]  ;;  %v2521_v20 = vld [vmem:[%s5172_s3 + $0x418] sm:$0xff] }
 0x11e   :  { %v748_v31 = vadd.f32 %v4235_v1, %v712_v21  ;;  %v674_v32 = vmax.f32 %v312_v23, %v564_v27  ;;  %v3169_v30 = vpack.c.bf16 %v2521_v20, %v2519_v19 }
 0x11f   :  { %v4316_v35 = vmax.f32 %v747_v25, 0.0  ;;  %v316_v36 = vpop.f32.mrb[18].mxu0 }
 0x120   :  { %v772_v37 = vmax.f32 %v748_v31, 0.0  ;;  %v568_v38 = vpop.f32.mrb[18].mxu1  ;;  %v318_v39 = vpop.f32.mrb[19].mxu0  ;;  %3152 = vmatpush1.bf16.msra.mxu0 %v3151_v24  ;;  %v2518_v31 = vld [vmem:[%s5172_s3 + $0x400] sm:$0xff] }
 0x121   :  { %v675_v41 = vmax.f32 %v316_v36, %v568_v38  ;;  %v570_v42 = vpop.f32.mrb[19].mxu1  ;;  %v4318_v43 = vld [vmem:[#allocation2 + $0x28] sm:$0xff]  ;;  %3154 = vmatprep.subr.bf16.mxu0 %v3153_v28 }
 0x122   :  { %797 = vst.msk [vmem:[#allocation2 + $0x38] sm:$0xff] %vm790_vm4, %v772_v37  ;;  %v676_v48 = vmax.f32 %v318_v39, %v570_v42  ;;  %2471 = vmatprep.mubr.msk.f32.mxu1 %vm790_vm4, %v4318_v43  ;;  %2480 = vmatprep.mubr.msk.f32.mxu0 %vm790_vm4, %v4318_v43  ;;  %v2523_v36 = vld [vmem:[%s5172_s3 + $0x428] sm:$0xff]  ;;  %v2525_v37 = vld [vmem:[%s5172_s3 + $0x438] sm:$0xff] }
 0x123   :  { %v713_v51 = vmax.f32 %v673_v26, %v675_v41  ;;  %1024 = vmatmul.mubr.f32.gmra.mrb[50].mxu1 %v4285_v4  ;;  %1146 = vmatmul.mubr.f32.gmra.mrb[52].mxu0 %v4285_v4  ;;  %v322_v52 = vpop.f32.mrb[20].mxu0  ;;  %v3167_v26 = vpack.c.bf16 %v2516_v17, %v2514_v16  ;;  %v3173_v49 = vpack.c.bf16 %v2525_v37, %v2523_v36 }
 0x124   :  { %v714_v53 = vmax.f32 %v674_v32, %v676_v48  ;;  %v574_v54 = vpop.f32.mrb[20].mxu1  ;;  %v324_v55 = vpop.f32.mrb[21].mxu0  ;;  %3156 = vmatpush1.bf16.msra.mxu0 %v3155_v40  ;;  %v2520_v32 = vld [vmem:[%s5172_s3 + $0x410] sm:$0xff]  ;;  %v3179_v17 = vpack.c.bf16 %v2528_v5, %v2526_v3 }
 0x125   :  { %v749_v57 = vadd.f32 %v4233_v62, %v713_v51  ;;  %v677_v58 = vmax.f32 %v322_v52, %v574_v54  ;;  %v576_v59 = vpop.f32.mrb[21].mxu1  ;;  %3158 = vmatprep.subr.bf16.mxu0 %v3157_v44  ;;  %v3171_v44 = vpack.c.bf16 %v2520_v32, %v2518_v31  ;;  %v2524_v51 = vld [vmem:[%s5172_s3 + $0x430] sm:$0xff]  ;;  %v2529_v54 = vld [vmem:[%s5172_s3 + $0x458] sm:$0xff] }
 0x126   :  { %v750_v0 = vadd.f32 %v4235_v1, %v714_v53  ;;  %v678_v2 = vmax.f32 %v324_v55, %v576_v59  ;;  %v2527_v53 = vld [vmem:[%s5172_s3 + $0x448] sm:$0xff] }
 0x127   :  { %v4353_v6 = vmax.f32 %v749_v57, 0.0  ;;  %v328_v7 = vpop.f32.mrb[22].mxu0 }
 0x128   :  { %v774_v8 = vmax.f32 %v750_v0, 0.0  ;;  %v580_v9 = vpop.f32.mrb[22].mxu1  ;;  %v330_v10 = vpop.f32.mrb[23].mxu0  ;;  %3160 = vmatpush1.bf16.msra.mxu0 %v3159_v56 }
 0x129   :  { %798 = vst [vmem:[#allocation2 + $0x40] sm:$0xff] %v4353_v6  ;;  %v679_v12 = vmax.f32 %v328_v7, %v580_v9  ;;  %v582_v13 = vpop.f32.mrb[23].mxu1  ;;  %v4356_v14 = vld [vmem:[#allocation2 + $0x38] sm:$0xff]  ;;  %3162 = vmatprep.subr.bf16.mxu0 %v3161_v60  ;;  %v3175_v60 = vpack.c.bf16 %v2524_v51, %v2522_v50  ;;  %v2531_v9 = vld [vmem:[%s5172_s3 + $0x468] sm:$0xff] }
 0x12a   :  { %799 = vst.msk [vmem:[#allocation2 + $0x48] sm:$0xff] %vm790_vm4, %v774_v8  ;;  %v680_v18 = vmax.f32 %v330_v10, %v582_v13  ;;  %2472 = vmatprep.mubr.msk.f32.mxu1 %vm790_vm4, %v4356_v14  ;;  %2481 = vmatprep.mubr.msk.f32.mxu0 %vm790_vm4, %v4356_v14  ;;  %v2533_v10 = vld [vmem:[%s5172_s3 + $0x478] sm:$0xff] }
 0x12b   :  { %v715_v21 = vmax.f32 %v677_v58, %v679_v12  ;;  %1030 = vmatmul.mubr.f32.gmra.mrb[52].mxu1 %v4316_v35  ;;  %1152 = vmatmul.mubr.f32.gmra.mrb[54].mxu0 %v4316_v35  ;;  %v334_v22 = vpop.f32.mrb[24].mxu0 }
 0x12c   :  { %v716_v23 = vmax.f32 %v678_v2, %v680_v18  ;;  %v586_v24 = vpop.f32.mrb[24].mxu1  ;;  %v336_v25 = vpop.f32.mrb[25].mxu0  ;;  %3164 = vmatpush1.bf16.msra.mxu0 %v3163_v11  ;;  %v3177_v2 = vpack.c.bf16 %v2529_v54, %v2527_v53 }
 0x12d   :  { %v751_v27 = vadd.f32 %v4233_v62, %v715_v21  ;;  %v681_v28 = vmax.f32 %v334_v22, %v586_v24  ;;  %v588_v29 = vpop.f32.mrb[25].mxu1  ;;  %3166 = vmatprep.subr.bf16.mxu0 %v3165_v15  ;;  %v3181_v21 = vpack.c.bf16 %v2533_v10, %v2531_v9  ;;  %v2530_v22 = vld [vmem:[%s5172_s3 + $0x460] sm:$0xff]  ;;  %v2544_v10 = vld [vmem:[%s5172_s3 + $0x490] sm:$0xff] }
 0x12e   :  { %v752_v33 = vadd.f32 %v4235_v1, %v716_v23  ;;  %v682_v34 = vmax.f32 %v336_v25, %v588_v29  ;;  %v2532_v23 = vld [vmem:[%s5172_s3 + $0x470] sm:$0xff]  ;;  %v2543_v25 = vld [vmem:[%s5172_s3 + $0x488] sm:$0xff]  ;;  %v2542_v9 = vld [vmem:[%s5172_s3 + $0x480] sm:$0xff] }
 0x12f   :  { %v4391_v38 = vmax.f32 %v751_v27, 0.0  ;;  %v340_v39 = vpop.f32.mrb[26].mxu0 }
 0x130   :  { %v776_v40 = vmax.f32 %v752_v33, 0.0  ;;  %v592_v41 = vpop.f32.mrb[26].mxu1  ;;  %v342_v42 = vpop.f32.mrb[27].mxu0  ;;  %3168 = vmatpush1.bf16.msra.mxu0 %v3167_v26  ;;  %v2545_v26 = vld [vmem:[%s5172_s3 + $0x498] sm:$0xff] }
 0x131   :  { %v683_v45 = vmax.f32 %v340_v39, %v592_v41  ;;  %v594_v46 = vpop.f32.mrb[27].mxu1  ;;  %v4393_v48 = vld [vmem:[#allocation2 + $0x48] sm:$0xff]  ;;  %3170 = vmatprep.subr.bf16.mxu0 %v3169_v30  ;;  %v3183_v30 = vpack.c.bf16 %v2532_v23, %v2530_v22 }
 0x132   :  { %801 = vst.msk [vmem:[#allocation2 + $0x58] sm:$0xff] %vm790_vm4, %v776_v40  ;;  %v684_v52 = vmax.f32 %v342_v42, %v594_v46  ;;  %2473 = vmatprep.mubr.msk.f32.mxu1 %vm790_vm4, %v4393_v48  ;;  %2482 = vmatprep.mubr.msk.f32.mxu0 %vm790_vm4, %v4393_v48 }
 0x133   :  { %v717_v55 = vmax.f32 %v681_v28, %v683_v45  ;;  %1036 = vmatmul.mubr.f32.gmra.mrb[54].mxu1 %v4353_v6  ;;  %1158 = vmatmul.mubr.f32.gmra.mrb[56].mxu0 %v4353_v6  ;;  %v346_v56 = vpop.f32.mrb[28].mxu0 }
 0x134   :  { %v718_v57 = vmax.f32 %v682_v34, %v684_v52  ;;  %v598_v58 = vpop.f32.mrb[28].mxu1  ;;  %v348_v59 = vpop.f32.mrb[29].mxu0  ;;  %3172 = vmatpush1.bf16.msra.mxu0 %v3171_v44  ;;  %v3185_v34 = vpack.c.bf16 %v2545_v26, %v2543_v25  ;;  %v2546_v26 = vld [vmem:[%s5172_s3 + $0x4a0] sm:$0xff] }
 0x135   :  { %v753_v61 = vadd.f32 %v4233_v62, %v717_v55  ;;  %v685_v63 = vmax.f32 %v346_v56, %v598_v58  ;;  %v600_v0 = vpop.f32.mrb[29].mxu1  ;;  %3174 = vmatprep.subr.bf16.mxu0 %v3173_v49 }
 0x136   :  { %v754_v7 = vadd.f32 %v4235_v1, %v718_v57  ;;  %v686_v8 = vmax.f32 %v348_v59, %v600_v0 }
 0x137   :  { %v4428_v11 = vmax.f32 %v753_v61, 0.0  ;;  %v352_v12 = vpop.f32.mrb[30].mxu0 }
 0x138   :  { %v778_v13 = vmax.f32 %v754_v7, 0.0  ;;  %v604_v15 = vpop.f32.mrb[30].mxu1  ;;  %v354_v16 = vpop.f32.mrb[31].mxu0  ;;  %3176 = vmatpush1.bf16.msra.mxu0 %v3175_v60 }
 0x139   :  { %v687_v18 = vmax.f32 %v352_v12, %v604_v15  ;;  %v606_v19 = vpop.f32.mrb[31].mxu1  ;;  %v4430_v20 = vld [vmem:[#allocation2 + $0x58] sm:$0xff]  ;;  %3178 = vmatprep.subr.bf16.mxu0 %v3177_v2  ;;  %v2547_v15 = vld [vmem:[%s5172_s3 + $0x4a8] sm:$0xff] }
 0x13a   :  { %803 = vst.msk [vmem:[#allocation2 + $0x68] sm:$0xff] %vm790_vm4, %v778_v13  ;;  %v688_v24 = vmax.f32 %v354_v16, %v606_v19  ;;  %2474 = vmatprep.mubr.msk.f32.mxu1 %vm790_vm4, %v4430_v20  ;;  %2483 = vmatprep.mubr.msk.f32.mxu0 %vm790_vm4, %v4430_v20  ;;  %v2549_v16 = vld [vmem:[%s5172_s3 + $0x4b8] sm:$0xff] }
 0x13b   :  { %v719_v27 = vmax.f32 %v685_v63, %v687_v18  ;;  %1042 = vmatmul.mubr.f32.gmra.mrb[56].mxu1 %v4391_v38  ;;  %1164 = vmatmul.mubr.f32.gmra.mrb[58].mxu0 %v4391_v38  ;;  %v358_v28 = vpop.f32.mrb[32].mxu0  ;;  %v3189_v25 = vpack.c.bf16 %v2549_v16, %v2547_v15 }
 0x13c   :  { %v720_v29 = vmax.f32 %v686_v8, %v688_v24  ;;  %3180 = vmatpush1.bf16.msra.mxu0 %v3179_v17  ;;  %v610_v31 = vpop.f32.mrb[32].mxu1  ;;  %v360_v32 = vpop.f32.mrb[33].mxu0 }
 0x13d   :  { %v755_v33 = vadd.f32 %v4233_v62, %v719_v27  ;;  %3182 = vmatprep.subr.bf16.mxu0 %v3181_v21  ;;  %v689_v36 = vmax.f32 %v358_v28, %v610_v31  ;;  %v612_v37 = vpop.f32.mrb[33].mxu1  ;;  %v3187_v21 = vpack.c.bf16 %v2544_v10, %v2542_v9  ;;  %v2548_v27 = vld [vmem:[%s5172_s3 + $0x4b0] sm:$0xff]  ;;  %v2553_v31 = vld [vmem:[%s5172_s3 + $0x4d8] sm:$0xff]  ;;  %v2559_v9 = vld [vmem:[%s5172_s3 + $0x508] sm:$0xff] }
 0x13e   :  { %v756_v39 = vadd.f32 %v4235_v1, %v720_v29  ;;  %v690_v40 = vmax.f32 %v360_v32, %v612_v37  ;;  %v3191_v37 = vpack.c.bf16 %v2548_v27, %v2546_v26  ;;  %v2561_v10 = vld [vmem:[%s5172_s3 + $0x518] sm:$0xff]  ;;  %v2563_v27 = vld [vmem:[%s5172_s3 + $0x528] sm:$0xff] }
 0x13f   :  { %v4453_v41 = vmax.f32 %v755_v33, 0.0  ;;  %v364_v42 = vpop.f32.mrb[34].mxu0 }
 0x140   :  { %v780_v44 = vmax.f32 %v756_v39, 0.0  ;;  %3184 = vmatpush1.bf16.msra.mxu0 %v3183_v30  ;;  %v616_v45 = vpop.f32.mrb[34].mxu1  ;;  %v366_v46 = vpop.f32.mrb[35].mxu0 }
 0x141   :  { %v4455_v49 = vld [vmem:[#allocation2 + $0x68] sm:$0xff]  ;;  %3186 = vmatprep.subr.bf16.mxu0 %v3185_v34  ;;  %v691_v50 = vmax.f32 %v364_v42, %v616_v45  ;;  %v618_v51 = vpop.f32.mrb[35].mxu1  ;;  %v2550_v45 = vld [vmem:[%s5172_s3 + $0x4c0] sm:$0xff] }
 0x142   :  { %805 = vst.msk [vmem:[#allocation2 + $0x78] sm:$0xff] %vm790_vm4, %v780_v44  ;;  %2475 = vmatprep.mubr.msk.f32.mxu1 %vm790_vm4, %v4455_v49  ;;  %2484 = vmatprep.mubr.msk.f32.mxu0 %vm790_vm4, %v4455_v49  ;;  %v692_v52 = vmax.f32 %v366_v46, %v618_v51 }
 0x143   :  { %1048 = vmatmul.mubr.f32.gmra.mrb[58].mxu1 %v4428_v11  ;;  %1170 = vmatmul.mubr.f32.gmra.mrb[60].mxu0 %v4428_v11  ;;  %v721_v53 = vmax.f32 %v689_v36, %v691_v50  ;;  %v370_v54 = vpop.f32.mrb[36].mxu0 }
 0x144   :  { %v722_v55 = vmax.f32 %v690_v40, %v692_v52  ;;  %v622_v56 = vpop.f32.mrb[36].mxu1  ;;  %v372_v57 = vpop.f32.mrb[37].mxu0  ;;  %v2555_v52 = vld [vmem:[%s5172_s3 + $0x4e8] sm:$0xff] }
 0x145   :  { %v757_v58 = vadd.f32 %v4233_v62, %v721_v53  ;;  %v693_v59 = vmax.f32 %v370_v54, %v622_v56  ;;  %v624_v60 = vpop.f32.mrb[37].mxu1  ;;  %v2557_v53 = vld [vmem:[%s5172_s3 + $0x4f8] sm:$0xff] }
 0x146   :  { %v758_v61 = vadd.f32 %v4235_v1, %v722_v55  ;;  %v694_v63 = vmax.f32 %v372_v57, %v624_v60 }
 0x147   :  { %v4466_v0 = vmax.f32 %v757_v58, 0.0  ;;  %v376_v2 = vpop.f32.mrb[38].mxu0 }
 0x148   :  { %v782_v3 = vmax.f32 %v758_v61, 0.0  ;;  %v628_v5 = vpop.f32.mrb[38].mxu1  ;;  %v378_v7 = vpop.f32.mrb[39].mxu0  ;;  %v3197_v61 = vpack.c.bf16 %v2557_v53, %v2555_v52  ;;  %v2573_v52 = vld [vmem:[%s5172_s3 + $0x578] sm:$0xff] }
 0x149   :  { %v4468_v8 = vld [vmem:[#allocation2 + $0x78] sm:$0xff]  ;;  %v695_v12 = vmax.f32 %v376_v2, %v628_v5  ;;  %v630_v13 = vpop.f32.mrb[39].mxu1  ;;  %v2556_v2 = vld [vmem:[%s5172_s3 + $0x4f0] sm:$0xff] }
 0x14a   :  { %2476 = vmatprep.mubr.msk.f32.mxu1 %vm790_vm4, %v4468_v8  ;;  %2485 = vmatprep.mubr.msk.f32.mxu0 %vm790_vm4, %v4468_v8  ;;  %807 = vst.msk [vmem:[#allocation2 + $0x88] sm:$0xff] %vm790_vm4, %v782_v3  ;;  %v696_v17 = vmax.f32 %v378_v7, %v630_v13 }
 0x14b   :  { %1054 = vmatmul.mubr.f32.gmra.mrb[60].mxu1 %v4453_v41  ;;  %1176 = vmatmul.mubr.f32.gmra.mrb[62].mxu0 %v4453_v41  ;;  %v723_v18 = vmax.f32 %v693_v59, %v695_v12  ;;  %v382_v19 = vpop.f32.mrb[40].mxu0 }
 0x14c   :  { %2534 = vmatprep.mubr.msk.f32.mxu0 %vm790_vm4, %v4318_v43  ;;  %v724_v22 = vmax.f32 %v694_v63, %v696_v17  ;;  %v634_v23 = vpop.f32.mrb[40].mxu1  ;;  %v384_v24 = vpop.f32.mrb[41].mxu0  ;;  %v2551_v43 = vld [vmem:[%s5172_s3 + $0x4c8] sm:$0xff]  ;;  %v2554_v63 = vld [vmem:[%s5172_s3 + $0x4e0] sm:$0xff] }
 0x14d   :  { %v759_v28 = vadd.f32 %v4233_v62, %v723_v18  ;;  %v697_v29 = vmax.f32 %v382_v19, %v634_v23  ;;  %v636_v30 = vpop.f32.mrb[41].mxu1  ;;  %v3193_v44 = vpack.c.bf16 %v2553_v31, %v2551_v43  ;;  %v3199_v17 = vpack.c.bf16 %v2556_v2, %v2554_v63  ;;  %v2558_v23 = vld [vmem:[%s5172_s3 + $0x500] sm:$0xff]  ;;  %v2576_v2 = vld [vmem:[%s5172_s3 + $0x590] sm:$0xff] }
 0x14e   :  { %v760_v32 = vadd.f32 %v4235_v1, %v724_v22  ;;  %v698_v33 = vmax.f32 %v384_v24, %v636_v30  ;;  %v3201_v22 = vpack.c.bf16 %v2561_v10, %v2559_v9  ;;  %v2560_v24 = vld [vmem:[%s5172_s3 + $0x510] sm:$0xff]  ;;  %v2574_v63 = vld [vmem:[%s5172_s3 + $0x580] sm:$0xff] }
 0x14f   :  { %1336 = vmatmul.mubr.f32.vlgmr.msra.gmra.mrb[48].mxu0 %v4285_v4  ;;  %v4506_v34 = vmax.f32 %v759_v28, 0.0  ;;  %v388_v36 = vpop.f32.mrb[42].mxu0  ;;  %v2552_v4 = vld [vmem:[%s5172_s3 + $0x4d0] sm:$0xff]  ;;  %v2565_v28 = vld [vmem:[%s5172_s3 + $0x538] sm:$0xff]  ;;  %v3203_v43 = vpack.c.bf16 %v2560_v24, %v2558_v23  ;;  %v3219_v9 = vpack.c.bf16 %v2576_v2, %v2574_v63  ;;  %v2614_v63 = vld [vmem:[%s5172_s3 + $0x680] sm:$0xff] }
 0x150   :  { %3188 = vmatpush1.bf16.msra.mxu0 %v3187_v21  ;;  %2535 = vmatprep.mubr.msk.f32.mxu0 %vm790_vm4, %v4356_v14  ;;  %v784_v39 = vmax.f32 %v760_v32, 0.0  ;;  %v640_v40 = vpop.f32.mrb[42].mxu1  ;;  %v390_v42 = vpop.f32.mrb[43].mxu0  ;;  %v3195_v57 = vpack.c.bf16 %v2552_v4, %v2550_v45  ;;  %v3205_v32 = vpack.c.bf16 %v2565_v28, %v2563_v27  ;;  %v2589_v23 = vld [vmem:[%s5172_s3 + $0x5f8] sm:$0xff]  ;;  %v2588_v27 = vld [vmem:[%s5172_s3 + $0x5f0] sm:$0xff]  ;;  %v2599_v28 = vld [vmem:[%s5172_s3 + $0x608] sm:$0xff] }
 0x151   :  { %3190 = vmatprep.subr.bf16.mxu0 %v3189_v25  ;;  %v4516_v46 = vld [vmem:[#allocation2 + $0x88] sm:$0xff]  ;;  %v699_v50 = vmax.f32 %v388_v36, %v640_v40  ;;  %v642_v51 = vpop.f32.mrb[43].mxu1  ;;  %v2564_v36 = vld [vmem:[%s5172_s3 + $0x530] sm:$0xff]  ;;  %v2569_v40 = vld [vmem:[%s5172_s3 + $0x558] sm:$0xff] }
 0x152   :  { %809 = vst.msk [vmem:[#allocation2 + $0x98] sm:$0xff] %vm790_vm4, %v784_v39  ;;  %2477 = vmatprep.mubr.msk.f32.mxu1 %vm790_vm4, %v4516_v46  ;;  %v700_v54 = vmax.f32 %v390_v42, %v642_v51  ;;  %v2567_v39 = vld [vmem:[%s5172_s3 + $0x548] sm:$0xff]  ;;  %v2616_v2 = vld [vmem:[%s5172_s3 + $0x690] sm:$0xff] }
 0x153   :  { %1342 = vmatmul.mubr.f32.gmra.mrb[50].mxu0 %v4316_v35  ;;  %1060 = vmatmul.mubr.f32.gmra.mrb[62].mxu1 %v4466_v0  ;;  %v725_v55 = vmax.f32 %v697_v29, %v699_v50  ;;  %v394_v56 = vpop.f32.mrb[44].mxu0  ;;  %v3209_v4 = vpack.c.bf16 %v2569_v40, %v2567_v39  ;;  %v2566_v50 = vld [vmem:[%s5172_s3 + $0x540] sm:$0xff]  ;;  %v2571_v51 = vld [vmem:[%s5172_s3 + $0x568] sm:$0xff] }
 0x154   :  { %3192 = vmatpush1.bf16.msra.mxu0 %v3191_v37  ;;  %2536 = vmatprep.mubr.msk.f32.mxu0 %vm790_vm4, %v4393_v48  ;;  %v726_v58 = vmax.f32 %v698_v33, %v700_v54  ;;  %v646_v59 = vpop.f32.mrb[44].mxu1  ;;  %v396_v60 = vpop.f32.mrb[45].mxu0  ;;  %v2562_v33 = vld [vmem:[%s5172_s3 + $0x520] sm:$0xff] }
 0x155   :  { %3194 = vmatprep.subr.bf16.mxu0 %v3193_v44  ;;  %v4538_v3 = vadd.f32 %v4233_v62, %v725_v55  ;;  %v701_v5 = vmax.f32 %v394_v56, %v646_v59  ;;  %v648_v7 = vpop.f32.mrb[45].mxu1  ;;  %v3213_v55 = vpack.c.bf16 %v2573_v52, %v2571_v51  ;;  %v2570_v56 = vld [vmem:[%s5172_s3 + $0x560] sm:$0xff]  ;;  %v2577_v59 = vld [vmem:[%s5172_s3 + $0x598] sm:$0xff]  ;;  %v2608_v52 = vld [vmem:[%s5172_s3 + $0x650] sm:$0xff] }
 0x156   :  { %v762_v12 = vadd.f32 %v4235_v1, %v726_v58  ;;  %v702_v13 = vmax.f32 %v396_v60, %v648_v7  ;;  %v2575_v58 = vld [vmem:[%s5172_s3 + $0x588] sm:$0xff]  ;;  %v2581_v7 = vld [vmem:[%s5172_s3 + $0x5b8] sm:$0xff]  ;;  %v2606_v51 = vld [vmem:[%s5172_s3 + $0x640] sm:$0xff] }
 0x157   :  { %1348 = vmatmul.mubr.f32.gmra.mrb[52].mxu0 %v4353_v6  ;;  %v785_v15 = vmax.f32 %v4538_v3, 0.0  ;;  %v400_v16 = vpop.f32.mrb[46].mxu0 }
 0x158   :  { %3196 = vmatpush1.bf16.msra.mxu0 %v3195_v57  ;;  %2537 = vmatprep.mubr.msk.f32.mxu0 %vm790_vm4, %v4430_v20  ;;  %v786_v18 = vmax.f32 %v762_v12, 0.0  ;;  %v652_v19 = vpop.f32.mrb[46].mxu1  ;;  %v402_v21 = vpop.f32.mrb[47].mxu0  ;;  %v2572_v57 = vld [vmem:[%s5172_s3 + $0x570] sm:$0xff]  ;;  %v2578_v12 = vld [vmem:[%s5172_s3 + $0x5a0] sm:$0xff] }
 0x159   :  { %3198 = vmatprep.subr.bf16.mxu0 %v3197_v61  ;;  %v703_v25 = vmax.f32 %v400_v16, %v652_v19  ;;  %v654_v26 = vpop.f32.mrb[47].mxu1  ;;  %v4603_v54 = vld [vmem:[#allocation2 + $0x98] sm:$0xff]  ;;  %v3215_v60 = vpack.c.bf16 %v2572_v57, %v2570_v56  ;;  %v3217_v61 = vpack.c.bf16 %v2577_v59, %v2575_v58  ;;  %v2583_v16 = vld [vmem:[%s5172_s3 + $0x5c8] sm:$0xff]  ;;  %v2582_v19 = vld [vmem:[%s5172_s3 + $0x5c0] sm:$0xff] }
 0x15a   :  { %811 = vst.msk [vmem:[#allocation2 + $0xa8] sm:$0xff] %vm790_vm4, %v786_v18  ;;  %v704_v29 = vmax.f32 %v402_v21, %v654_v26  ;;  %v2584_v21 = vld [vmem:[%s5172_s3 + $0x5d0] sm:$0xff]  ;;  %v2586_v26 = vld [vmem:[%s5172_s3 + $0x5e0] sm:$0xff]  ;;  %v2615_v59 = vld [vmem:[%s5172_s3 + $0x688] sm:$0xff] }
 0x15b   :  { %1354 = vmatmul.mubr.f32.gmra.mrb[54].mxu0 %v4391_v38  ;;  %v727_v30 = vmax.f32 %v701_v5, %v703_v25  ;;  %v2579_v5 = vld [vmem:[%s5172_s3 + $0x5a8] sm:$0xff]  ;;  %v3227_v24 = vpack.c.bf16 %v2584_v21, %v2582_v19  ;;  %v2610_v57 = vld [vmem:[%s5172_s3 + $0x660] sm:$0xff]  ;;  %v2612_v58 = vld [vmem:[%s5172_s3 + $0x670] sm:$0xff] }
 0x15c   :  { %3200 = vmatpush1.bf16.msra.mxu0 %v3199_v17  ;;  %2538 = vmatprep.mubr.msk.f32.mxu0 %vm790_vm4, %v4455_v49  ;;  %v728_v31 = vmax.f32 %v702_v13, %v704_v29  ;;  %v3221_v10 = vpack.c.bf16 %v2581_v7, %v2579_v5  ;;  %v2580_v13 = vld [vmem:[%s5172_s3 + $0x5b0] sm:$0xff]  ;;  %v2585_v17 = vld [vmem:[%s5172_s3 + $0x5d8] sm:$0xff]  ;;  %v2619_v5 = vld [vmem:[%s5172_s3 + $0x6a8] sm:$0xff] }
 0x15d   :  { %3202 = vmatprep.subr.bf16.mxu0 %v3201_v22  ;;  %v4574_v37 = vadd.f32 %v4233_v62, %v727_v30  ;;  %v3207_v62 = vpack.c.bf16 %v2564_v36, %v2562_v33  ;;  %v3225_v18 = vpack.c.bf16 %v2585_v17, %v2583_v16  ;;  %v2587_v22 = vld [vmem:[%s5172_s3 + $0x5e8] sm:$0xff]  ;;  %v2601_v29 = vld [vmem:[%s5172_s3 + $0x618] sm:$0xff]  ;;  %v3231_v30 = vpack.c.bf16 %v2588_v27, %v2586_v26  ;;  %v2622_v19 = vld [vmem:[%s5172_s3 + $0x6c0] sm:$0xff] }
 0x15e   :  { %v764_v42 = vadd.f32 %v4235_v1, %v728_v31  ;;  %v2568_v1 = vld [vmem:[%s5172_s3 + $0x550] sm:$0xff]  ;;  %v3229_v25 = vpack.c.bf16 %v2589_v23, %v2587_v22  ;;  %v2598_v31 = vld [vmem:[%s5172_s3 + $0x600] sm:$0xff]  ;;  %v2603_v33 = vld [vmem:[%s5172_s3 + $0x628] sm:$0xff] }
 0x15f   :  { %1360 = vmatmul.mubr.f32.gmra.mrb[56].mxu0 %v4428_v11  ;;  %v787_v44 = vmax.f32 %v4574_v37, 0.0  ;;  %v3211_v53 = vpack.c.bf16 %v2568_v1, %v2566_v50  ;;  %v2605_v36 = vld [vmem:[%s5172_s3 + $0x638] sm:$0xff]  ;;  %v2623_v16 = vld [vmem:[%s5172_s3 + $0x6c8] sm:$0xff]  ;;  %v2624_v21 = vld [vmem:[%s5172_s3 + $0x6d0] sm:$0xff] }
 0x160   :  { %3204 = vmatpush1.bf16.msra.mxu0 %v3203_v43  ;;  %2539 = vmatprep.mubr.msk.f32.mxu0 %vm790_vm4, %v4468_v8  ;;  %v788_v45 = vmax.f32 %v764_v42, 0.0  ;;  %v3233_v43 = vpack.c.bf16 %v2601_v29, %v2599_v28  ;;  %v3237_v40 = vpack.c.bf16 %v2605_v36, %v2603_v33  ;;  %v2602_v42 = vld [vmem:[%s5172_s3 + $0x620] sm:$0xff]  ;;  %v2621_v7 = vld [vmem:[%s5172_s3 + $0x6b8] sm:$0xff]  ;;  %v2627_v22 = vld [vmem:[%s5172_s3 + $0x6e8] sm:$0xff] }
 0x161   :  { %3206 = vmatprep.subr.bf16.mxu0 %v3205_v32  ;;  %v2600_v32 = vld [vmem:[%s5172_s3 + $0x610] sm:$0xff]  ;;  %v2625_v17 = vld [vmem:[%s5172_s3 + $0x6d8] sm:$0xff]  ;;  %v2626_v27 = vld [vmem:[%s5172_s3 + $0x6e0] sm:$0xff] }
 0x162   :  { %813 = vst.msk [vmem:[#allocation2 + $0xb8] sm:$0xff] %vm790_vm4, %v788_v45  ;;  %v3235_v39 = vpack.c.bf16 %v2600_v32, %v2598_v31  ;;  %v2607_v45 = vld [vmem:[%s5172_s3 + $0x648] sm:$0xff]  ;;  %v2629_v23 = vld [vmem:[%s5172_s3 + $0x6f8] sm:$0xff]  ;;  %v2628_v28 = vld [vmem:[%s5172_s3 + $0x6f0] sm:$0xff] }
 0x163   :  { %1366 = vmatmul.mubr.f32.gmra.mrb[58].mxu0 %v4453_v41  ;;  %v3261_v26 = vpack.c.bf16 %v2629_v23, %v2627_v22  ;;  %v2631_v29 = vld [vmem:[%s5172_s3 + $0x708] sm:$0xff]  ;;  %v2630_v32 = vld [vmem:[%s5172_s3 + $0x700] sm:$0xff]  ;;  %v2632_v33 = vld [vmem:[%s5172_s3 + $0x710] sm:$0xff] }
 0x164   :  { %3208 = vmatpush1.bf16.msra.mxu0 %v3207_v62  ;;  %2540 = vmatprep.mubr.msk.f32.mxu0 %vm790_vm4, %v4516_v46  ;;  %v2604_v62 = vld [vmem:[%s5172_s3 + $0x630] sm:$0xff]  ;;  %v2635_v36 = vld [vmem:[%s5172_s3 + $0x728] sm:$0xff]  ;;  %v2662_v37 = vld [vmem:[%s5174_s5 + $0xb8] sm:$0xff] }
 0x165   :  { %3210 = vmatprep.subr.bf16.mxu0 %v3209_v4  ;;  %v2609_v4 = vld [vmem:[%s5172_s3 + $0x658] sm:$0xff]  ;;  %v3239_v50 = vpack.c.bf16 %v2604_v62, %v2602_v42  ;;  %v2634_v62 = vld [vmem:[%s5172_s3 + $0x720] sm:$0xff]  ;;  %v2668_v23 = vld [vmem:[%s5174_s5 + $0xe8] sm:$0xff] }
 0x166   :  { %v3241_v1 = vpack.c.bf16 %v2609_v4, %v2607_v45  ;;  %v2636_v45 = vld [vmem:[%s5172_s3 + $0x730] sm:$0xff]  ;;  %v2639_v4 = vld [vmem:[%s5172_s3 + $0x748] sm:$0xff]  ;;  %v2667_v22 = vld [vmem:[%s5174_s5 + $0xe0] sm:$0xff] }
 0x167   :  { %1372 = vmatmul.mubr.f32.gmra.mrb[60].mxu0 %v4466_v0 }
 0x168   :  { %3212 = vmatpush1.bf16.msra.mxu0 %v3211_v53  ;;  %2541 = vmatprep.mubr.msk.f32.mxu0 %vm790_vm4, %v4603_v54  ;;  %v2611_v53 = vld [vmem:[%s5172_s3 + $0x668] sm:$0xff] }
 0x169   :  { %3214 = vmatprep.subr.bf16.mxu0 %v3213_v55  ;;  %v3243_v55 = vpack.c.bf16 %v2608_v52, %v2606_v51  ;;  %v2638_v51 = vld [vmem:[%s5172_s3 + $0x740] sm:$0xff]  ;;  %v2640_v52 = vld [vmem:[%s5172_s3 + $0x750] sm:$0xff] }
 0x16b   :  { %1378 = vmatmul.mubr.f32.gmra.mrb[62].mxu0 %v4506_v34 }
 0x16c   :  { %3216 = vmatpush1.bf16.msra.mxu0 %v3215_v60  ;;  %2590 = vmatprep.mubr.msk.f32.mxu0 %vm790_vm4, %v4356_v14  ;;  %v3223_v14 = vpack.c.bf16 %v2580_v13, %v2578_v12  ;;  %v3247_v60 = vpack.c.bf16 %v2612_v58, %v2610_v57  ;;  %v2618_v12 = vld [vmem:[%s5172_s3 + $0x6a0] sm:$0xff]  ;;  %v2620_v13 = vld [vmem:[%s5172_s3 + $0x6b0] sm:$0xff] }
 0x16d   :  { %3218 = vmatprep.subr.bf16.mxu0 %v3217_v61  ;;  %v2642_v57 = vld [vmem:[%s5172_s3 + $0x760] sm:$0xff]  ;;  %v2644_v58 = vld [vmem:[%s5172_s3 + $0x770] sm:$0xff] }
 0x170   :  { %3220 = vmatpush1.bf16.msra.mxu0 %v3219_v9  ;;  %v3251_v9 = vpack.c.bf16 %v2616_v2, %v2614_v63  ;;  %v2657_v63 = vld [vmem:[%s5174_s5 + $0x90] sm:$0xff] }
 0x171   :  { %3222 = vmatprep.subr.bf16.mxu0 %v3221_v10  ;;  %v3253_v10 = vpack.c.bf16 %v2621_v7, %v2619_v5  ;;  %v2658_v5 = vld [vmem:[%s5174_s5 + $0x98] sm:$0xff] }
 0x172   :  { %v3285_v7 = vpack.c.bf16 %v2658_v5, %v2657_v63 }
 0x174   :  { %3224 = vmatpush1.bf16.msra.mxu0 %v3223_v14  ;;  %v3255_v14 = vpack.c.bf16 %v2620_v13, %v2618_v12  ;;  %v2663_v12 = vld [vmem:[%s5174_s5 + $0xc0] sm:$0xff]  ;;  %v2664_v13 = vld [vmem:[%s5174_s5 + $0xc8] sm:$0xff] }
 0x175   :  { %3226 = vmatprep.subr.bf16.mxu0 %v3225_v18  ;;  %v3257_v18 = vpack.c.bf16 %v2625_v17, %v2623_v16  ;;  %v3294_v16 = vpack.c.bf16 %v2664_v13, %v2663_v12  ;;  %v2665_v17 = vld [vmem:[%s5174_s5 + $0xd0] sm:$0xff] }
 0x178   :  { %3228 = vmatpush1.bf16.msra.mxu0 %v3227_v24  ;;  %v3259_v24 = vpack.c.bf16 %v2624_v21, %v2622_v19 }
 0x179   :  { %3230 = vmatprep.subr.bf16.mxu0 %v3229_v25  ;;  %v4773_v25 = vld [vmem:[#allocation2 + $0xa8] sm:$0xff] }
 0x17c   :  { %3232 = vmatpush1.bf16.msra.mxu0 %v3231_v30  ;;  %v2633_v30 = vld [vmem:[%s5172_s3 + $0x718] sm:$0xff] }
 0x17d   :  { %3234 = vmatprep.subr.bf16.mxu0 %v3233_v43  ;;  %v3263_v43 = vpack.c.bf16 %v2628_v28, %v2626_v27  ;;  %v3265_v31 = vpack.c.bf16 %v2633_v30, %v2631_v29  ;;  %v3476_v30 = vmov 0.0  }
 0x17e   :  { %2822 = vmatprep.mubr.msk.f32.mxu1 %vm3475_vm5, %v3476_v30 }
 0x17f   :  { %1554 = vmatmul.mubr.f32.vlgmr.msra.gmra.mrb[48].mxu0 %v4316_v35  ;;  %v2613_v35 = vld [vmem:[%s5172_s3 + $0x678] sm:$0xff] }
 0x180   :  { %2591 = vmatprep.mubr.msk.f32.mxu0 %vm790_vm4, %v4393_v48  ;;  %3236 = vmatpush1.bf16.msra.mxu0 %v3235_v39  ;;  %v3245_v56 = vpack.c.bf16 %v2613_v35, %v2611_v53  ;;  %v2637_v39 = vld [vmem:[%s5172_s3 + $0x738] sm:$0xff]  ;;  %v2643_v53 = vld [vmem:[%s5172_s3 + $0x768] sm:$0xff] }
 0x181   :  { %3238 = vmatprep.subr.bf16.mxu0 %v3237_v40  ;;  %v3267_v40 = vpack.c.bf16 %v2632_v33, %v2630_v32  ;;  %v3269_v42 = vpack.c.bf16 %v2637_v39, %v2635_v36  ;;  %v2645_v35 = vld [vmem:[%s5172_s3 + $0x778] sm:$0xff] }
 0x183   :  { %1560 = vmatmul.mubr.f32.gmra.mrb[50].mxu0 %v4353_v6  ;;  %v2617_v6 = vld [vmem:[%s5172_s3 + $0x698] sm:$0xff] }
 0x184   :  { %2592 = vmatprep.mubr.msk.f32.mxu0 %vm790_vm4, %v4430_v20  ;;  %3240 = vmatpush1.bf16.msra.mxu0 %v3239_v50  ;;  %v3249_v61 = vpack.c.bf16 %v2617_v6, %v2615_v59  ;;  %v2641_v50 = vld [vmem:[%s5172_s3 + $0x758] sm:$0xff]  ;;  %v3279_v59 = vpack.c.bf16 %v2644_v58, %v2642_v57  ;;  %v3474_v6 = vmov 0.0|0.0  }
 0x185   :  { %3242 = vmatprep.subr.bf16.mxu0 %v3241_v1  ;;  %v3273_v1 = vpack.c.bf16 %v2641_v50, %v2639_v4  ;;  %3281 = vmatprep.subr.bf16.mxu1 %v3474_v6 }
 0x187   :  { %1566 = vmatmul.mubr.f32.gmra.mrb[52].mxu0 %v4391_v38 }
 0x188   :  { %2593 = vmatprep.mubr.msk.f32.mxu0 %vm790_vm4, %v4455_v49  ;;  %3244 = vmatpush1.bf16.msra.mxu0 %v3243_v55  ;;  %v3275_v55 = vpack.c.bf16 %v2640_v52, %v2638_v51 }
 0x189   :  { %3246 = vmatprep.subr.bf16.mxu0 %v3245_v56  ;;  %v3277_v56 = vpack.c.bf16 %v2645_v35, %v2643_v53 }
 0x18b   :  { %1572 = vmatmul.mubr.f32.gmra.mrb[54].mxu0 %v4428_v11 }
 0x18c   :  { %2594 = vmatprep.mubr.msk.f32.mxu0 %vm790_vm4, %v4468_v8  ;;  %3248 = vmatpush1.bf16.msra.mxu0 %v3247_v60  ;;  %v2655_v60 = vld [vmem:[%s5174_s5 + $0x80] sm:$0xff] }
 0x18d   :  { %3250 = vmatprep.subr.bf16.mxu0 %v3249_v61  ;;  %v2656_v61 = vld [vmem:[%s5174_s5 + $0x88] sm:$0xff] }
 0x18e   :  { %v3282_v2 = vpack.c.bf16 %v2656_v61, %v2655_v60 }
 0x18f   :  { %1578 = vmatmul.mubr.f32.gmra.mrb[56].mxu0 %v4453_v41 }
 0x190   :  { %2595 = vmatprep.mubr.msk.f32.mxu0 %vm790_vm4, %v4516_v46  ;;  %3252 = vmatpush1.bf16.msra.mxu0 %v3251_v9  ;;  %v1618_v9 = vld [vmem:[#allocation2 + $0x40] sm:$0xff] }
 0x191   :  { %3254 = vmatprep.subr.bf16.mxu0 %v3253_v10  ;;  %3283 = vmatpush3.bf16.msra.mxu1 %v3282_v2 }
 0x192   :  { %3284 = vmatprep.subr.bf16.mxu1 %v3474_v6 }
 0x193   :  { %1584 = vmatmul.mubr.f32.gmra.mrb[58].mxu0 %v4466_v0 }
 0x194   :  { %2596 = vmatprep.mubr.msk.f32.mxu0 %vm790_vm4, %v4603_v54  ;;  %3256 = vmatpush1.bf16.msra.mxu0 %v3255_v14  ;;  %v2666_v14 = vld [vmem:[%s5174_s5 + $0xd8] sm:$0xff] }
 0x195   :  { %3258 = vmatprep.subr.bf16.mxu0 %v3257_v18  ;;  %3286 = vmatpush3.bf16.msra.mxu1 %v3285_v7  ;;  %v3297_v18 = vpack.c.bf16 %v2666_v14, %v2665_v17 }
 0x196   :  { %3287 = vmatprep.subr.bf16.mxu1 %v3474_v6 }
 0x197   :  { %1590 = vmatmul.mubr.f32.gmra.mrb[60].mxu0 %v4506_v34 }
 0x198   :  { %3260 = vmatpush1.bf16.msra.mxu0 %v3259_v24  ;;  %2597 = vmatprep.mubr.msk.f32.mxu0 %vm790_vm4, %v4773_v25  ;;  %v3300_v24 = vpack.c.bf16 %v2668_v23, %v2667_v22 }
 0x199   :  { %3262 = vmatprep.subr.bf16.mxu0 %v3261_v26  ;;  %v2670_v26 = vld [vmem:[%s5174_s5 + $0xf8] sm:$0xff] }
 0x19b   :  { %1596 = vmatmul.mubr.f32.gmra.mrb[62].mxu0 %v785_v15 }
 0x19c   :  { %3264 = vmatpush1.bf16.msra.mxu0 %v3263_v43  ;;  %2646 = vmatprep.mubr.msk.f32.mxu0 %vm790_vm4, %v4393_v48  ;;  %v3271_v48 = vpack.c.bf16 %v2636_v45, %v2634_v62 }
 0x19d   :  { %3266 = vmatprep.subr.bf16.mxu0 %v3265_v31 }
 0x1a0   :  { %3268 = vmatpush1.bf16.msra.mxu0 %v3267_v40 }
 0x1a1   :  { %3270 = vmatprep.subr.bf16.mxu0 %v3269_v42 }
 0x1a4   :  { %3272 = vmatpush1.bf16.msra.mxu0 %v3271_v48 }
 0x1a5   :  { %3274 = vmatprep.subr.bf16.mxu0 %v3273_v1 }
 0x1a8   :  { %3276 = vmatpush1.bf16.msra.mxu0 %v3275_v55 }
 0x1a9   :  { %3278 = vmatprep.subr.bf16.mxu0 %v3277_v56 }
 0x1ac   :  { %3280 = vmatpush1.bf16.msra.mxu0 %v3279_v59 }
 0x1af   :  { %1772 = vmatmul.mubr.f32.vlgmr.msra.gmra.mrb[48].mxu0 %v1618_v9 }
 0x1b0   :  { %2647 = vmatprep.mubr.msk.f32.mxu0 %vm790_vm4, %v4430_v20 }
 0x1b3   :  { %1778 = vmatmul.mubr.f32.gmra.mrb[50].mxu0 %v4391_v38  ;;  %v1633_v38 = vld [vmem:[#allocation2 + $0xb8] sm:$0xff] }
 0x1b4   :  { %2648 = vmatprep.mubr.msk.f32.mxu0 %vm790_vm4, %v4455_v49 }
 0x1b7   :  { %1784 = vmatmul.mubr.f32.gmra.mrb[52].mxu0 %v4428_v11 }
 0x1b8   :  { %2649 = vmatprep.mubr.msk.f32.mxu0 %vm790_vm4, %v4468_v8 }
 0x1bb   :  { %1790 = vmatmul.mubr.f32.gmra.mrb[54].mxu0 %v4453_v41 }
 0x1bc   :  { %2650 = vmatprep.mubr.msk.f32.mxu0 %vm790_vm4, %v4516_v46  ;;  %v2660_v46 = vld [vmem:[%s5174_s5 + $0xa8] sm:$0xff] }
 0x1bf   :  { %1796 = vmatmul.mubr.f32.gmra.mrb[56].mxu0 %v4466_v0 }
 0x1c0   :  { %2651 = vmatprep.mubr.msk.f32.mxu0 %vm790_vm4, %v4603_v54 }
 0x1c3   :  { %1802 = vmatmul.mubr.f32.gmra.mrb[58].mxu0 %v4506_v34  ;;  %v2659_v34 = vld [vmem:[%s5174_s5 + $0xa0] sm:$0xff] }
 0x1c4   :  { %2652 = vmatprep.mubr.msk.f32.mxu0 %vm790_vm4, %v4773_v25  ;;  %v3288_v3 = vpack.c.bf16 %v2660_v46, %v2659_v34  ;;  %v2669_v25 = vld [vmem:[%s5174_s5 + $0xf0] sm:$0xff] }
 0x1c5   :  { %v3303_v27 = vpack.c.bf16 %v2670_v26, %v2669_v25 }
 0x1c6   :  { %3289 = vmatpush3.bf16.msra.mxu1 %v3288_v3 }
 0x1c7   :  { %1808 = vmatmul.mubr.f32.gmra.mrb[60].mxu0 %v785_v15  ;;  %3290 = vmatprep.subr.bf16.mxu1 %v3474_v6  ;;  %v2661_v15 = vld [vmem:[%s5174_s5 + $0xb0] sm:$0xff] }
 0x1c8   :  { %2653 = vmatprep.mubr.msk.f32.mxu0 %vm790_vm4, %v1633_v38  ;;  %v1863_v38 = vld [vmem:[%s5174_s5] sm:$0xff] }
 0x1cb   :  { %1814 = vmatmul.mubr.f32.gmra.mrb[62].mxu0 %v787_v44  ;;  %v3291_v44 = vpack.c.bf16 %v2662_v37, %v2661_v15  ;;  %v1865_v37 = vld [vmem:[%s5174_s5 + $0x10] sm:$0xff] }
 0x1cd   :  { %3292 = vmatpush3.bf16.msra.mxu1 %v3291_v44  ;;  %v1866_v44 = vld [vmem:[%s5174_s5 + $0x18] sm:$0xff] }
 0x1ce   :  { %3293 = vmatprep.subr.bf16.mxu1 %v3474_v6 }
 0x1d1   :  { %3295 = vmatpush3.bf16.msra.mxu1 %v3294_v16  ;;  %v3309_v16 = vpack.c.bf16 %v1866_v44, %v1865_v37  ;;  %v2687_v44 = vld [vmem:[%s5174_s5 + $0x180] sm:$0xff] }
 0x1d2   :  { %3296 = vmatprep.subr.bf16.mxu1 %v3474_v6 }
 0x1d5   :  { %3298 = vmatpush3.bf16.msra.mxu1 %v3297_v18  ;;  %v1867_v18 = vld [vmem:[%s5174_s5 + $0x20] sm:$0xff] }
 0x1d6   :  { %3299 = vmatprep.subr.bf16.mxu1 %v3474_v6 }
 0x1d9   :  { %3301 = vmatpush3.bf16.msra.mxu1 %v3300_v24 }
 0x1da   :  { %3302 = vmatprep.subr.bf16.mxu1 %v3474_v6 }
 0x1dd   :  { %3304 = vmatpush3.bf16.msra.mxu1 %v3303_v27 }
 0x1de   :  { %3305 = vmatprep.subr.bf16.mxu1 %v3474_v6 }
 0x1ee   :  { %v1019_v11 = vpop.f32.mrb[48].mxu1 }
 0x1ef   :  { %v1021_v20 = vpop.f32.mrb[49].mxu1 }
 0x1f6   :  { %v1025_v41 = vpop.f32.mrb[50].mxu1 }
 0x1f7   :  { %v1027_v49 = vpop.f32.mrb[51].mxu1 }
 0x1fe   :  { %v1031_v0 = vpop.f32.mrb[52].mxu1 }
 0x1ff   :  { %v1033_v8 = vpop.f32.mrb[53].mxu1 }
 0x206   :  { %v1037_v54 = vpop.f32.mrb[54].mxu1 }
 0x207   :  { %v1039_v10 = vpop.f32.mrb[55].mxu1 }
 0x20e   :  { %v1043_v19 = vpop.f32.mrb[56].mxu1 }
 0x20f   :  { %v1045_v21 = vpop.f32.mrb[57].mxu1 }
 0x216   :  { %v1049_v28 = vpop.f32.mrb[58].mxu1 }
 0x217   :  { %v1051_v29 = vpop.f32.mrb[59].mxu1 }
 0x21e   :  { %v1055_v43 = vpop.f32.mrb[60].mxu1 }
 0x21f   :  { %v1057_v31 = vpop.f32.mrb[61].mxu1 }
 0x226   :  { %v1061_v32 = vpop.f32.mrb[62].mxu1 }
 0x227   :  { %v1063_v33 = vpop.f32.mrb[63].mxu1 }
 0x282   :  { %v1773_v36 = vpop.f32.mrb[48].mxu0 }
 0x283   :  { %v3401_v39 = vadd.f32 %v1773_v36, %v1019_v11  ;;  %v1775_v40 = vpop.f32.mrb[49].mxu0  ;;  %v1864_v11 = vld [vmem:[%s5174_s5 + $0x8] sm:$0xff] }
 0x284   :  { %v3402_v42 = vadd.f32 %v1775_v40, %v1021_v20  ;;  %v2654_v20 = vld [vmem:[%s5175_s4] ss:$0 sm:$0xff]  ;;  %v3306_v46 = vpack.c.bf16 %v1864_v11, %v1863_v38  ;;  %v2680_v11 = vld [vmem:[%s5174_s5 + $0x148] sm:$0xff] }
 0x285   :  { %v2679_v38 = vld [vmem:[%s5174_s5 + $0x140] sm:$0xff] }
 0x286   :  { %v1836_v62 = vmax.f32 %v3401_v39, %v3402_v42  ;;  %v1779_v45 = vpop.f32.mrb[50].mxu0  ;;  %v1873_v42 = vld [vmem:[%s5174_s5 + $0x50] sm:$0xff] }
 0x287   :  { %v3403_v4 = vadd.f32 %v1779_v45, %v1025_v41  ;;  %v1781_v50 = vpop.f32.mrb[51].mxu0 }
 0x288   :  { %v3404_v48 = vadd.f32 %v1781_v50, %v1027_v49  ;;  %v1876_v50 = vld [vmem:[%s5174_s5 + $0x68] sm:$0xff] }
 0x28a   :  { %v1837_v1 = vmax.f32 %v3403_v4, %v3404_v48  ;;  %v1785_v51 = vpop.f32.mrb[52].mxu0  ;;  %v1875_v4 = vld [vmem:[%s5174_s5 + $0x60] sm:$0xff] }
 0x28b   :  { %v3405_v52 = vadd.f32 %v1785_v51, %v1031_v0  ;;  %v1787_v53 = vpop.f32.mrb[53].mxu0  ;;  %v3324_v48 = vpack.c.bf16 %v1876_v50, %v1875_v4  ;;  %v1878_v51 = vld [vmem:[%s5174_s5 + $0x78] sm:$0xff]  ;;  %v2223_v4 = vld [vmem:[%s5176_s7 + $0x10] sm:$0xff] }
 0x28c   :  { %v4917_v35 = vmax.f32 %v1836_v62, %v1837_v1  ;;  %v3406_v55 = vadd.f32 %v1787_v53, %v1033_v8  ;;  %v1874_v62 = vld [vmem:[%s5174_s5 + $0x58] sm:$0xff]  ;;  %v1877_v1 = vld [vmem:[%s5174_s5 + $0x70] sm:$0xff] }
 0x28d   :  { %v3321_v45 = vpack.c.bf16 %v1874_v62, %v1873_v42  ;;  %v2221_v62 = vld [vmem:[%s5176_s7] sm:$0xff] }
 0x28e   :  { %v1838_v56 = vmax.f32 %v3405_v52, %v3406_v55  ;;  %v1791_v57 = vpop.f32.mrb[54].mxu0  ;;  %v3327_v52 = vpack.c.bf16 %v1878_v51, %v1877_v1  ;;  %v1855_v53 = vadd.f32 %v2654_v20, %v4917_v35  ;;  %v2671_v55 = vld [vmem:[%s5174_s5 + $0x100] sm:$0xff]  ;;  %v2674_v35 = vld [vmem:[%s5174_s5 + $0x118] sm:$0xff]  ;;  %v2226_v1 = vld [vmem:[%s5176_s7 + $0x28] sm:$0xff] }
 0x28f   :  { %v3407_v58 = vadd.f32 %v1791_v57, %v1037_v54  ;;  %v1793_v59 = vpop.f32.mrb[55].mxu0 }
 0x290   :  { %v3408_v60 = vadd.f32 %v1793_v59, %v1039_v10  ;;  %v2673_v59 = vld [vmem:[%s5174_s5 + $0x110] sm:$0xff] }
 0x292   :  { %v1839_v61 = vmax.f32 %v3407_v58, %v3408_v60  ;;  %v1797_v63 = vpop.f32.mrb[56].mxu0  ;;  %v1859_v58 = vmax.f32 %v1855_v53, 0.0  ;;  %v3333_v60 = vpack.c.bf16 %v2674_v35, %v2673_v59  ;;  %v2228_v53 = vld [vmem:[%s5176_s7 + $0x38] sm:$0xff]  ;;  %v2231_v59 = vld [vmem:[%s5176_s7 + $0x50] sm:$0xff] }
 0x293   :  { %v3409_v2 = vadd.f32 %v1797_v63, %v1043_v19  ;;  %v1799_v5 = vpop.f32.mrb[57].mxu0  ;;  %v1868_v19 = vld [vmem:[%s5174_s5 + $0x28] sm:$0xff]  ;;  %v2232_v35 = vld [vmem:[%s5176_s7 + $0x58] sm:$0xff] }
 0x294   :  { %v1845_v7 = vmax.f32 %v1838_v56, %v1839_v61  ;;  %v3410_v9 = vadd.f32 %v1799_v5, %v1045_v21  ;;  %v3312_v26 = vpack.c.bf16 %v1868_v19, %v1867_v18  ;;  %v2672_v56 = vld [vmem:[%s5174_s5 + $0x108] sm:$0xff]  ;;  %v2675_v61 = vld [vmem:[%s5174_s5 + $0x120] sm:$0xff]  ;;  %v2677_v5 = vld [vmem:[%s5174_s5 + $0x130] sm:$0xff] }
 0x295   :  { %v3330_v57 = vpack.c.bf16 %v2672_v56, %v2671_v55  ;;  %v2676_v63 = vld [vmem:[%s5174_s5 + $0x128] sm:$0xff]  ;;  %v2229_v56 = vld [vmem:[%s5176_s7 + $0x40] sm:$0xff] }
 0x296   :  { %v1856_v41 = vadd.f32 %v2654_v20, %v1845_v7  ;;  %v1840_v49 = vmax.f32 %v3409_v2, %v3410_v9  ;;  %v1803_v0 = vpop.f32.mrb[58].mxu0  ;;  %v3336_v2 = vpack.c.bf16 %v2676_v63, %v2675_v61  ;;  %v2678_v7 = vld [vmem:[%s5174_s5 + $0x138] sm:$0xff]  ;;  %v2692_v18 = vld [vmem:[%s5174_s5 + $0x1a8] sm:$0xff]  ;;  %v2233_v61 = vld [vmem:[%s5176_s7 + $0x60] sm:$0xff] }
 0x297   :  { %v3411_v8 = vadd.f32 %v1803_v0, %v1049_v28  ;;  %v1805_v34 = vpop.f32.mrb[59].mxu0  ;;  %v1869_v28 = vld [vmem:[%s5174_s5 + $0x30] sm:$0xff]  ;;  %v3339_v9 = vpack.c.bf16 %v2678_v7, %v2677_v5  ;;  %v2234_v63 = vld [vmem:[%s5176_s7 + $0x68] sm:$0xff]  ;;  %v2236_v7 = vld [vmem:[%s5176_s7 + $0x78] sm:$0xff] }
 0x298   :  { %v1860_v3 = vmax.f32 %v1856_v41, 0.0  ;;  %v3412_v15 = vadd.f32 %v1805_v34, %v1051_v29  ;;  %v1870_v29 = vld [vmem:[%s5174_s5 + $0x38] sm:$0xff]  ;;  %v2681_v41 = vld [vmem:[%s5174_s5 + $0x150] sm:$0xff]  ;;  %v2684_v34 = vld [vmem:[%s5174_s5 + $0x168] sm:$0xff] }
 0x299   :  { %v2235_v5 = vld [vmem:[%s5176_s7 + $0x70] sm:$0xff] }
 0x29a   :  { %v1841_v54 = vmax.f32 %v3411_v8, %v3412_v15  ;;  %v1809_v10 = vpop.f32.mrb[60].mxu0  ;;  %2823 = vmatmul.mubr.f32.vlgmr.msra.gmra.mrb[64].mxu1 %v1860_v3  ;;  %v2683_v8 = vld [vmem:[%s5174_s5 + $0x160] sm:$0xff]  ;;  %v2685_v3 = vld [vmem:[%s5174_s5 + $0x170] sm:$0xff]  ;;  %v2686_v15 = vld [vmem:[%s5174_s5 + $0x178] sm:$0xff] }
 0x29b   :  { %v3413_v12 = vadd.f32 %v1809_v10, %v1055_v43  ;;  %3307 = vmatpush3.bf16.msra.mxu1 %v3306_v46  ;;  %v1811_v13 = vpop.f32.mrb[61].mxu0  ;;  %2857 = vmatprep.mubr.msk.f32.mxu1 %vm3475_vm5, %v3476_v30  ;;  %v3348_v46 = vpack.c.bf16 %v2684_v34, %v2683_v8  ;;  %v3351_v37 = vpack.c.bf16 %v2686_v15, %v2685_v3 }
 0x29c   :  { %v1846_v17 = vmax.f32 %v1840_v49, %v1841_v54  ;;  %v3414_v14 = vadd.f32 %v1811_v13, %v1057_v31  ;;  %3308 = vmatprep.subr.bf16.mxu1 %v3474_v6  ;;  %v3315_v31 = vpack.c.bf16 %v1870_v29, %v1869_v28  ;;  %v2682_v49 = vld [vmem:[%s5174_s5 + $0x158] sm:$0xff]  ;;  %v2688_v54 = vld [vmem:[%s5174_s5 + $0x188] sm:$0xff]  ;;  %v2689_v13 = vld [vmem:[%s5174_s5 + $0x190] sm:$0xff] }
 0x29d   :  { %v3345_v0 = vpack.c.bf16 %v2682_v49, %v2681_v41  ;;  %v3354_v10 = vpack.c.bf16 %v2688_v54, %v2687_v44  ;;  %v2698_v28 = vld [vmem:[%s5174_s5 + $0x1d8] sm:$0xff]  ;;  %v2315_v54 = vand.u32 127, %v731_v47 }
 0x29e   :  { %v4943_v21 = vadd.f32 %v2654_v20, %v1846_v17  ;;  %v1842_v22 = vmax.f32 %v3413_v12, %v3414_v14  ;;  %v1815_v23 = vpop.f32.mrb[62].mxu0  ;;  %v2691_v14 = vld [vmem:[%s5174_s5 + $0x1a0] sm:$0xff] }
 0x29f   :  { %v3415_v24 = vadd.f32 %v1815_v23, %v1061_v32  ;;  %3310 = vmatpush3.bf16.msra.mxu1 %v3309_v16  ;;  %v1817_v25 = vpop.f32.mrb[63].mxu0  ;;  %v1871_v32 = vld [vmem:[%s5174_s5 + $0x40] sm:$0xff]  ;;  %v2690_v16 = vld [vmem:[%s5174_s5 + $0x198] sm:$0xff]  ;;  %v3360_v19 = vpack.c.bf16 %v2692_v18, %v2691_v14  ;;  %vm2316_vm6 = vcmp.lt.s32.totalorder %v2315_v54, 10 }
 0x2a0   :  { %v3416_v27 = vadd.f32 %v1817_v25, %v1063_v33  ;;  %3311 = vmatprep.subr.bf16.mxu1 %v3474_v6  ;;  %v1872_v33 = vld [vmem:[%s5174_s5 + $0x48] sm:$0xff]  ;;  %v1861_v12 = vmax.f32 %v4943_v21, 0.0  ;;  %v3357_v17 = vpack.c.bf16 %v2690_v16, %v2689_v13  ;;  %v2693_v21 = vld [vmem:[%s5174_s5 + $0x1b0] sm:$0xff] }
 0x2a1   :  { %v3318_v40 = vpack.c.bf16 %v1872_v33, %v1871_v32  ;;  %v2696_v25 = vld [vmem:[%s5174_s5 + $0x1c8] sm:$0xff]  ;;  %v2701_v32 = vld [vmem:[%s5174_s5 + $0x1f0] sm:$0xff]  ;;  %v2702_v33 = vld [vmem:[%s5174_s5 + $0x1f8] sm:$0xff] }
 0x2a2   :  { %v1843_v43 = vmax.f32 %v3415_v24, %v3416_v27  ;;  %v2695_v24 = vld [vmem:[%s5174_s5 + $0x1c0] sm:$0xff]  ;;  %v2697_v27 = vld [vmem:[%s5174_s5 + $0x1d0] sm:$0xff] }
 0x2a3   :  { %3313 = vmatpush3.bf16.msra.mxu1 %v3312_v26  ;;  %v3366_v26 = vpack.c.bf16 %v2696_v25, %v2695_v24  ;;  %v3369_v29 = vpack.c.bf16 %v2698_v28, %v2697_v27 }
 0x2a4   :  { %v1847_v36 = vmax.f32 %v1842_v22, %v1843_v43  ;;  %3314 = vmatprep.subr.bf16.mxu1 %v3474_v6  ;;  %v2694_v22 = vld [vmem:[%s5174_s5 + $0x1b8] sm:$0xff]  ;;  %v2699_v43 = vld [vmem:[%s5174_s5 + $0x1e0] sm:$0xff] }
 0x2a5   :  { %v3363_v23 = vpack.c.bf16 %v2694_v22, %v2693_v21 }
 0x2a6   :  { %v4959_v39 = vadd.f32 %v2654_v20, %v1847_v36  ;;  %v3342_v20 = vpack.c.bf16 %v2680_v11, %v2679_v38 }
 0x2a7   :  { %3316 = vmatpush3.bf16.msra.mxu1 %v3315_v31  ;;  %v2700_v31 = vld [vmem:[%s5174_s5 + $0x1e8] sm:$0xff] }
 0x2a8   :  { %3317 = vmatprep.subr.bf16.mxu1 %v3474_v6  ;;  %v3372_v36 = vpack.c.bf16 %v2700_v31, %v2699_v43  ;;  %v1862_v42 = vmax.f32 %v4959_v39, 0.0  ;;  %v2224_v39 = vld [vmem:[%s5176_s7 + $0x18] sm:$0xff] }
 0x2ab   :  { %3319 = vmatpush3.bf16.msra.mxu1 %v3318_v40  ;;  %v3375_v40 = vpack.c.bf16 %v2702_v33, %v2701_v32 }
 0x2ac   :  { %3320 = vmatprep.subr.bf16.mxu1 %v3474_v6 }
 0x2af   :  { %3322 = vmatpush3.bf16.msra.mxu1 %v3321_v45  ;;  %v2222_v45 = vld [vmem:[%s5176_s7 + $0x8] sm:$0xff] }
 0x2b0   :  { %3323 = vmatprep.subr.bf16.mxu1 %v3474_v6  ;;  %v3378_v50 = vpack.c.bf16 %v2222_v45, %v2221_v62 }
 0x2b3   :  { %3325 = vmatpush3.bf16.msra.mxu1 %v3324_v48  ;;  %v3381_v48 = vpack.c.bf16 %v2224_v39, %v2223_v4 }
 0x2b4   :  { %3326 = vmatprep.subr.bf16.mxu1 %v3474_v6 }
 0x2b7   :  { %3328 = vmatpush3.bf16.msra.mxu1 %v3327_v52  ;;  %v2227_v52 = vld [vmem:[%s5176_s7 + $0x30] sm:$0xff] }
 0x2b8   :  { %3329 = vmatprep.subr.bf16.mxu1 %v3474_v6  ;;  %v3387_v55 = vpack.c.bf16 %v2228_v53, %v2227_v52 }
 0x2ba   :  { %2858 = vmatmul.mubr.f32.vlgmr.msra.gmra.mrb[66].mxu1 %v1859_v58 }
 0x2bb   :  { %3331 = vmatpush3.bf16.msra.mxu1 %v3330_v57  ;;  %2892 = vmatprep.mubr.msk.f32.mxu1 %vm3475_vm5, %v3476_v30  ;;  %v2230_v57 = vld [vmem:[%s5176_s7 + $0x48] sm:$0xff] }
 0x2bc   :  { %3332 = vmatprep.subr.bf16.mxu1 %v3474_v6  ;;  %v3390_v58 = vpack.c.bf16 %v2230_v57, %v2229_v56 }
 0x2bf   :  { %3334 = vmatpush3.bf16.msra.mxu1 %v3333_v60  ;;  %v3393_v60 = vpack.c.bf16 %v2232_v35, %v2231_v59 }
 0x2c0   :  { %3335 = vmatprep.subr.bf16.mxu1 %v3474_v6 }
 0x2c3   :  { %3337 = vmatpush3.bf16.msra.mxu1 %v3336_v2  ;;  %v3396_v2 = vpack.c.bf16 %v2234_v63, %v2233_v61 }
 0x2c4   :  { %3338 = vmatprep.subr.bf16.mxu1 %v3474_v6 }
 0x2c7   :  { %3340 = vmatpush3.bf16.msra.mxu1 %v3339_v9  ;;  %v3399_v9 = vpack.c.bf16 %v2236_v7, %v2235_v5 }
 0x2c8   :  { %3341 = vmatprep.subr.bf16.mxu1 %v3474_v6 }
 0x2cb   :  { %3343 = vmatpush3.bf16.msra.mxu1 %v3342_v20 }
 0x2cc   :  { %3344 = vmatprep.subr.bf16.mxu1 %v3474_v6 }
 0x2cf   :  { %3346 = vmatpush3.bf16.msra.mxu1 %v3345_v0 }
 0x2d0   :  { %3347 = vmatprep.subr.bf16.mxu1 %v3474_v6 }
 0x2d3   :  { %3349 = vmatpush3.bf16.msra.mxu1 %v3348_v46 }
 0x2d4   :  { %3350 = vmatprep.subr.bf16.mxu1 %v3474_v6 }
 0x2d7   :  { %3352 = vmatpush3.bf16.msra.mxu1 %v3351_v37 }
 0x2d8   :  { %3353 = vmatprep.subr.bf16.mxu1 %v3474_v6 }
 0x2da   :  { %2893 = vmatmul.mubr.f32.vlgmr.msra.gmra.mrb[68].mxu1 %v1861_v12 }
 0x2db   :  { %3355 = vmatpush3.bf16.msra.mxu1 %v3354_v10  ;;  %2927 = vmatprep.mubr.msk.f32.mxu1 %vm3475_vm5, %v3476_v30  ;;  %v2704_v10 = vld [vmem:[%s5178_s8] ss:$0 sm:$0xff] }
 0x2dc   :  { %3356 = vmatprep.subr.bf16.mxu1 %v3474_v6 }
 0x2df   :  { %3358 = vmatpush3.bf16.msra.mxu1 %v3357_v17 }
 0x2e0   :  { %3359 = vmatprep.subr.bf16.mxu1 %v3474_v6 }
 0x2e3   :  { %3361 = vmatpush3.bf16.msra.mxu1 %v3360_v19 }
 0x2e4   :  { %3362 = vmatprep.subr.bf16.mxu1 %v3474_v6 }
 0x2e7   :  { %3364 = vmatpush3.bf16.msra.mxu1 %v3363_v23 }
 0x2e8   :  { %3365 = vmatprep.subr.bf16.mxu1 %v3474_v6 }
 0x2eb   :  { %3367 = vmatpush3.bf16.msra.mxu1 %v3366_v26 }
 0x2ec   :  { %3368 = vmatprep.subr.bf16.mxu1 %v3474_v6 }
 0x2ef   :  { %3370 = vmatpush3.bf16.msra.mxu1 %v3369_v29 }
 0x2f0   :  { %3371 = vmatprep.subr.bf16.mxu1 %v3474_v6 }
 0x2f3   :  { %3373 = vmatpush3.bf16.msra.mxu1 %v3372_v36 }
 0x2f4   :  { %3374 = vmatprep.subr.bf16.mxu1 %v3474_v6 }
 0x2f7   :  { %3376 = vmatpush3.bf16.msra.mxu1 %v3375_v40 }
 0x2f8   :  { %3377 = vmatprep.subr.bf16.mxu1 %v3474_v6 }
 0x2fa   :  { %2928 = vmatmul.mubr.f32.vlgmr.msra.gmra.mrb[70].mxu1 %v1862_v42 }
 0x2fb   :  { %2962 = vmatprep.mubr.msk.f32.mxu1 %vm3475_vm5, %v3476_v30  ;;  %3379 = vmatpush3.bf16.msra.mxu1 %v3378_v50  ;;  %v2225_v30 = vld [vmem:[%s5176_s7 + $0x20] sm:$0xff] }
 0x2fc   :  { %3380 = vmatprep.subr.bf16.mxu1 %v3474_v6  ;;  %v3384_v51 = vpack.c.bf16 %v2226_v1, %v2225_v30 }
 0x2ff   :  { %3382 = vmatpush3.bf16.msra.mxu1 %v3381_v48 }
 0x300   :  { %3383 = vmatprep.subr.bf16.mxu1 %v3474_v6 }
 0x303   :  { %3385 = vmatpush3.bf16.msra.mxu1 %v3384_v51 }
 0x304   :  { %3386 = vmatprep.subr.bf16.mxu1 %v3474_v6 }
 0x307   :  { %3388 = vmatpush3.bf16.msra.mxu1 %v3387_v55 }
 0x308   :  { %3389 = vmatprep.subr.bf16.mxu1 %v3474_v6 }
 0x30b   :  { %3391 = vmatpush3.bf16.msra.mxu1 %v3390_v58 }
 0x30c   :  { %3392 = vmatprep.subr.bf16.mxu1 %v3474_v6 }
 0x30f   :  { %3394 = vmatpush3.bf16.msra.mxu1 %v3393_v60 }
 0x310   :  { %3395 = vmatprep.subr.bf16.mxu1 %v3474_v6 }
 0x313   :  { %3397 = vmatpush3.bf16.msra.mxu1 %v3396_v2 }
 0x314   :  { %3398 = vmatprep.subr.bf16.mxu1 %v3474_v6  ;;  %v2703_v6 = vld [vmem:[%s5177_s6] ss:$0 sm:$0xff] }
 0x317   :  { %3400 = vmatpush3.bf16.msra.mxu1 %v3399_v9 }
 0x36d   :  { %v1962_v38 = vpop.f32.mrb[64].mxu1 }
 0x36e   :  { %v2824_v11 = vpop.f32.mrb[65].mxu1 }
 0x38d   :  { %v2032_v20 = vpop.f32.mrb[66].mxu1 }
 0x38e   :  { %v2033_v41 = vadd.f32 %v2032_v20, %v1962_v38  ;;  %v2859_v49 = vpop.f32.mrb[67].mxu1 }
 0x3ad   :  { %v2119_v0 = vpop.f32.mrb[68].mxu1 }
 0x3ae   :  { %v2123_v8 = vadd.f32 %v2119_v0, %v2033_v41  ;;  %v2894_v34 = vpop.f32.mrb[69].mxu1 }
 0x3cd   :  { %v2207_v46 = vpop.f32.mrb[70].mxu1 }
 0x3ce   :  { %v2211_v3 = vadd.f32 %v2207_v46, %v2123_v8  ;;  %v2929_v15 = vpop.f32.mrb[71].mxu1 }
 0x3d0   :  { %v2219_v37 = vadd.f32 %v2703_v6, %v2211_v3 }
 0x3d2   :  { %v2220_v44 = vmax.f32 %v2219_v37, 0.0 }
 0x3d4   :  { %2963 = vmatmul.mubr.f32.vlgmr.msra.gmra.mrb[72].mxu1 %v2220_v44 }
 0x4a7   :  { %v2310_v12 = vpop.f32.mrb[72].mxu1 }
 0x4a8   :  { %v2311_v13 = vadd.f32 %v2704_v10, %v2310_v12  ;;  %v2964_v16 = vpop.f32.mrb[73].mxu1 }
 0x4aa   :  { %v2317_v17 = vsel %vm2316_vm6, %v2311_v13, -1e+30 }
 0x4ab   :  { %2318 = vmax.xlane.f32.xlu0 %v2317_v17 }
 0x538   :  { %v2319_v14 = vpop.xlane.xlu0 %2318 }
 0x539   :  { %v2320_v18 = vsub.f32 %v2317_v17, %v2319_v14 }
 0x53b   :  { %v2321_v19 = vmul.f32 1.442695, %v2320_v18 }
 0x53d   :  { %3469 = vpow2.f32 %v2321_v19 }
 0x547   :  { %v3470_v21 = vpop.eup %3469 }
 0x548   :  { %v2323_v22 = vsel %vm2316_vm6, %v3470_v21, 0.0 }
 0x549   :  { %2324 = vadd.xlane.f32.xlu0 %v2323_v22 }
 0x5d6   :  { %v2325_v23 = vpop.xlane.xlu0 %2324 }
 0x5d7   :  { %3471 = vlog2.f32 %v2325_v23 }
 0x5e1   :  { %v3472_v47 = vpop.eup %3471 }
 0x5e2   :  { %v2327_v24 = vmul.f32 0.6931472, %v3472_v47 }
 0x5e4   :  { %v2328_v25 = vsub.f32 %v2320_v18, %v2327_v24 }
 0x5e6   :  { %2329 = vst [vmem:[%s5179_s9] sm:$0xff] %v2328_v25 }

</bundles_post_ra>
